<compile_context>
chip_gen: v7x
topology: tpu7x:2x2x1
jax: 0.10.0
libtpu: 0.0.40
codegen_flags: <defaults>
</compile_context>

<pallas_src>
import jax
import jax.numpy as jnp
import numpy as np
from jax.experimental import pallas as pl
from jax.experimental.pallas import tpu as pltpu

IN_DIM = 28 * 28                     # 784
ENC_DIMS = [IN_DIM, 256, 64, 16, 3]
DEC_DIMS = [3, 16, 64, 256, IN_DIM]
# After fusing the activation-free 16->3 / 3->16 pair into one exact 16->16 linear:
FUSED_DIMS = [IN_DIM, 256, 64, 16, 16, 64, 256, IN_DIM]
N_LAYERS = len(FUSED_DIMS) - 1       # 7 fused layers


# ----------------------------------------------------------------------------
# Kernel: one (tb, 784) batch tile of the full autoencoder forward
# ----------------------------------------------------------------------------
def _ae_kernel(x_ref, *refs):
    # refs = (w1, b1, ..., w7, b7, o_ref); weights bf16, biases f32
    o_ref = refs[-1]
    wb = refs[:-1]

    def linear(h, w_ref, b_ref):
        # bf16 MXU inputs, f32 accumulation, f32 bias add
        return jnp.dot(h.astype(w_ref.dtype), w_ref[...],
                       preferred_element_type=jnp.float32) + b_ref[...]

    h = x_ref[...]                                   # f32 tile; cast per-matmul
    for li in range(N_LAYERS):
        h = linear(h, wb[2 * li], wb[2 * li + 1])
        if li < N_LAYERS - 1:
            h = jnp.maximum(h, 0.0)                  # ReLU (VPU, f32)
        else:
            h = jnp.tanh(h)                          # final Tanh (EUP slot)
    o_ref[...] = h.astype(o_ref.dtype)


# ----------------------------------------------------------------------------
# Parameter prep (done ONCE, outside the per-call path)
# ----------------------------------------------------------------------------
def _prep_params(params):
    """params: flat [W1, b1, ..., W8, b8]; W stored (in, out), b (1, out), f32.

    Fuses the 16->3 encoder output layer with the 3->16 decoder input layer
    (no nonlinearity between them, so exact in f32):
        W_f = W_e4 @ W_d1,  b_f = b_e4 @ W_d1 + b_d1
    Casts weights to bf16 (MXU inputs); keeps biases f32 (VPU path)."""
    ws = [params[2 * i].astype(jnp.float32) for i in range(8)]
    bs = [params[2 * i + 1].astype(jnp.float32) for i in range(8)]

    w_fused = ws[3] @ ws[4]                          # (16, 16)
    b_fused = bs[3] @ ws[4] + bs[4]                  # (1, 16)

    fused_ws = ws[:3] + [w_fused] + ws[5:]
    fused_bs = bs[:3] + [b_fused] + bs[5:]

    prepped = []
    for w, b in zip(fused_ws, fused_bs):
        prepped += [w.astype(jnp.bfloat16), b]
    return prepped


# ----------------------------------------------------------------------------
# Forward wrapper
# ----------------------------------------------------------------------------
def _round_up(n, m):
    return ((n + m - 1) // m) * m


def line_coder_forward(x, prepped, tb_max=512):
    """x: (B, 784) float32. prepped: output of _prep_params."""
    B = x.shape[0]

    # Ragged-aware tiling: never balloon Bp far past B.
    num_tiles = pl.cdiv(B, tb_max)
    if B >= 256:
        num_tiles = max(num_tiles, 2)      # keep both v7x TensorCores busy
    tb = _round_up(pl.cdiv(B, num_tiles), 8)
    Bp = num_tiles * tb

    # Row-pad only when needed (usually < 8 garbage rows, sliced off at the end).
    x_p = x if Bp == B else jnp.zeros((Bp, IN_DIM), x.dtype).at[:B].set(x)

    # x / out tiled over the batch; weights & biases VMEM-resident (constant map).
    in_specs = [pl.BlockSpec((tb, IN_DIM), lambda i: (i, 0))]
    for p in prepped:
        in_specs.append(pl.BlockSpec(p.shape, lambda i: (0, 0)))

    layer_flops = 2 * sum(m * n for m, n in zip(FUSED_DIMS[:-1], FUSED_DIMS[1:]))
    ce = pl.CostEstimate(
        flops=int(Bp * layer_flops),
        transcendentals=int(Bp * IN_DIM),
        bytes_accessed=int(Bp * IN_DIM * 4 * 2 +               # x in + out, f32
                           sum(int(p.size) * p.dtype.itemsize for p in prepped)))

    out = pl.pallas_call(
        _ae_kernel,
        out_shape=jax.ShapeDtypeStruct((Bp, IN_DIM), jnp.float32),
        grid=(num_tiles,),
        in_specs=in_specs,
        out_specs=pl.BlockSpec((tb, IN_DIM), lambda i: (i, 0)),
        compiler_params=pltpu.CompilerParams(
            dimension_semantics=("parallel",),       # v7x: shard tiles across TCs
            vmem_limit_bytes=32 * 1024 * 1024),      # safe headroom on v5e's 16MiB default
        cost_estimate=ce,
    )(x_p, *prepped)

    return out if Bp == B else out[:B]


def make_line_coder(params, tb_max=512):
    """Prep weights once and return a jitted forward closed over them."""
    prepped = [jnp.asarray(p) for p in _prep_params(params)]

    @jax.jit
    def forward(x):
        return line_coder_forward(x, prepped, tb_max=tb_max)

    return forward


# ----------------------------------------------------------------------------
# Deterministic parameter init (PyTorch-style uniform(-1/sqrt(fan_in), +))
# ----------------------------------------------------------------------------
def init_params(key):
    params = []
    dims = list(zip(ENC_DIMS[:-1], ENC_DIMS[1:])) + list(zip(DEC_DIMS[:-1], DEC_DIMS[1:]))
    for (fan_in, fan_out) in dims:
        key, kw, kb = jax.random.split(key, 3)
        bound = 1.0 / np.sqrt(fan_in)
        # stored directly as (in, out) — i.e. the transpose of PyTorch's (out, in)
        w = jax.random.uniform(kw, (fan_in, fan_out), jnp.float32, -bound, bound)
        b = jax.random.uniform(kb, (1, fan_out), jnp.float32, -bound, bound)
        params += [w, b]
    return params


def reference_forward(x, params):
    """Pure-JAX f32 reference (unfused, matches the nn.Module layer-for-layer)."""
    h = x
    for li in range(8):
        w, b = params[2 * li], params[2 * li + 1]
        h = h @ w + b
        if li < 3 or (3 < li < 7):           # ReLU after enc 1-3 and dec 1-3
            h = jnp.maximum(h, 0.0)
        elif li == 7:                        # Tanh on final decoder layer
            h = jnp.tanh(h)
    return h


if __name__ == "__main__":
    key = jax.random.PRNGKey(0)
    key, kx = jax.random.split(key)

    B = 32
    x = jax.random.uniform(kx, (B, IN_DIM), jnp.float32, -1.0, 1.0)
    params = init_params(key)

    # tb_max=8 exercises a multi-step pipelined grid at this tiny test batch;
    # the production default tb_max=512 amortizes per-step overhead on v6e/v7x.
    forward = make_line_coder(params, tb_max=8)
    out = jax.block_until_ready(forward(x))

    ref = reference_forward(x, params)
    assert out.shape == (B, IN_DIM)
    err = float(jnp.max(jnp.abs(out - ref)))
    assert jnp.allclose(out, ref, atol=2e-2, rtol=2e-2), \
        f"mismatch vs reference, max|err|={err}"

    print("KERNEL_OK")
</pallas_src>

<mosaic_0001>
module attributes {stable_mosaic.version = 11 : i64} {
  func.func @_ae_kernel(%arg0: i32, %arg1: memref<8x784xf32, #tpu.memory_space<vmem>>, %arg2: memref<784x256xbf16, #tpu.memory_space<vmem>>, %arg3: memref<1x256xf32, #tpu.memory_space<vmem>>, %arg4: memref<256x64xbf16, #tpu.memory_space<vmem>>, %arg5: memref<1x64xf32, #tpu.memory_space<vmem>>, %arg6: memref<64x16xbf16, #tpu.memory_space<vmem>>, %arg7: memref<1x16xf32, #tpu.memory_space<vmem>>, %arg8: memref<16x16xbf16, #tpu.memory_space<vmem>>, %arg9: memref<1x16xf32, #tpu.memory_space<vmem>>, %arg10: memref<16x64xbf16, #tpu.memory_space<vmem>>, %arg11: memref<1x64xf32, #tpu.memory_space<vmem>>, %arg12: memref<64x256xbf16, #tpu.memory_space<vmem>>, %arg13: memref<1x256xf32, #tpu.memory_space<vmem>>, %arg14: memref<256x784xbf16, #tpu.memory_space<vmem>>, %arg15: memref<1x784xf32, #tpu.memory_space<vmem>>, %arg16: memref<8x784xf32, #tpu.memory_space<vmem>>) attributes {dimension_semantics = [#tpu.dimension_semantics<parallel>], iteration_bounds = array<i64: 4>, scalar_prefetch = 0 : i64, scratch_operands = 0 : i64, tpu.core_type = #tpu.core_type<tc>, window_params = [{transform_indices = @transform_0, window_bounds = array<i64: 8, 784>}, {pipeline_mode = #tpu.pipeline_mode<synchronous>, transform_indices = @transform_1, window_bounds = array<i64: 784, 256>}, {pipeline_mode = #tpu.pipeline_mode<synchronous>, transform_indices = @transform_2, window_bounds = array<i64: 1, 256>}, {pipeline_mode = #tpu.pipeline_mode<synchronous>, transform_indices = @transform_3, window_bounds = array<i64: 256, 64>}, {pipeline_mode = #tpu.pipeline_mode<synchronous>, transform_indices = @transform_4, window_bounds = array<i64: 1, 64>}, {pipeline_mode = #tpu.pipeline_mode<synchronous>, transform_indices = @transform_5, window_bounds = array<i64: 64, 16>}, {pipeline_mode = #tpu.pipeline_mode<synchronous>, transform_indices = @transform_6, window_bounds = array<i64: 1, 16>}, {pipeline_mode = #tpu.pipeline_mode<synchronous>, transform_indices = @transform_7, window_bounds = array<i64: 16, 16>}, {pipeline_mode = #tpu.pipeline_mode<synchronous>, transform_indices = @transform_8, window_bounds = array<i64: 1, 16>}, {pipeline_mode = #tpu.pipeline_mode<synchronous>, transform_indices = @transform_9, window_bounds = array<i64: 16, 64>}, {pipeline_mode = #tpu.pipeline_mode<synchronous>, transform_indices = @transform_10, window_bounds = array<i64: 1, 64>}, {pipeline_mode = #tpu.pipeline_mode<synchronous>, transform_indices = @transform_11, window_bounds = array<i64: 64, 256>}, {pipeline_mode = #tpu.pipeline_mode<synchronous>, transform_indices = @transform_12, window_bounds = array<i64: 1, 256>}, {pipeline_mode = #tpu.pipeline_mode<synchronous>, transform_indices = @transform_13, window_bounds = array<i64: 256, 784>}, {pipeline_mode = #tpu.pipeline_mode<synchronous>, transform_indices = @transform_14, window_bounds = array<i64: 1, 784>}, {transform_indices = @transform_15, window_bounds = array<i64: 8, 784>}]} {
    %c0 = arith.constant 0 : index
    %c0_0 = arith.constant 0 : index
    %0 = vector.load %arg1[%c0, %c0_0] : memref<8x784xf32, #tpu.memory_space<vmem>>, vector<8x784xf32>
    %1 = arith.truncf %0 : vector<8x784xf32> to vector<8x784xbf16>
    %c0_1 = arith.constant 0 : index
    %c0_2 = arith.constant 0 : index
    %2 = vector.load %arg2[%c0_1, %c0_2] : memref<784x256xbf16, #tpu.memory_space<vmem>>, vector<784x256xbf16>
    %cst = arith.constant dense<0.000000e+00> : vector<8x256xf32>
    %3 = tpu.matmul %1, %2, %cst {dimension_numbers = #tpu.dot_dimension_numbers<[1], [0], [0], [1], [0, 0, 1, 1], [], []>} : vector<8x784xbf16>, vector<784x256xbf16>, vector<8x256xf32> -> vector<8x256xf32>
    %c0_3 = arith.constant 0 : index
    %c0_4 = arith.constant 0 : index
    %4 = vector.load %arg3[%c0_3, %c0_4] : memref<1x256xf32, #tpu.memory_space<vmem>>, vector<1x256xf32>
    %5 = vector.broadcast %4 : vector<1x256xf32> to vector<8x256xf32>
    %6 = arith.addf %3, %5 : vector<8x256xf32>
    %cst_5 = arith.constant 0.000000e+00 : f32
    %7 = vector.broadcast %cst_5 : f32 to vector<8x256xf32>
    %8 = arith.maximumf %6, %7 : vector<8x256xf32>
    %9 = arith.truncf %8 : vector<8x256xf32> to vector<8x256xbf16>
    %c0_6 = arith.constant 0 : index
    %c0_7 = arith.constant 0 : index
    %10 = vector.load %arg4[%c0_6, %c0_7] : memref<256x64xbf16, #tpu.memory_space<vmem>>, vector<256x64xbf16>
    %cst_8 = arith.constant dense<0.000000e+00> : vector<8x64xf32>
    %11 = tpu.matmul %9, %10, %cst_8 {dimension_numbers = #tpu.dot_dimension_numbers<[1], [0], [0], [1], [0, 0, 1, 1], [], []>} : vector<8x256xbf16>, vector<256x64xbf16>, vector<8x64xf32> -> vector<8x64xf32>
    %c0_9 = arith.constant 0 : index
    %c0_10 = arith.constant 0 : index
    %12 = vector.load %arg5[%c0_9, %c0_10] : memref<1x64xf32, #tpu.memory_space<vmem>>, vector<1x64xf32>
    %13 = vector.broadcast %12 : vector<1x64xf32> to vector<8x64xf32>
    %14 = arith.addf %11, %13 : vector<8x64xf32>
    %cst_11 = arith.constant 0.000000e+00 : f32
    %15 = vector.broadcast %cst_11 : f32 to vector<8x64xf32>
    %16 = arith.maximumf %14, %15 : vector<8x64xf32>
    %17 = arith.truncf %16 : vector<8x64xf32> to vector<8x64xbf16>
    %c0_12 = arith.constant 0 : index
    %c0_13 = arith.constant 0 : index
    %18 = vector.load %arg6[%c0_12, %c0_13] : memref<64x16xbf16, #tpu.memory_space<vmem>>, vector<64x16xbf16>
    %cst_14 = arith.constant dense<0.000000e+00> : vector<8x16xf32>
    %19 = tpu.matmul %17, %18, %cst_14 {dimension_numbers = #tpu.dot_dimension_numbers<[1], [0], [0], [1], [0, 0, 1, 1], [], []>} : vector<8x64xbf16>, vector<64x16xbf16>, vector<8x16xf32> -> vector<8x16xf32>
    %c0_15 = arith.constant 0 : index
    %c0_16 = arith.constant 0 : index
    %20 = vector.load %arg7[%c0_15, %c0_16] : memref<1x16xf32, #tpu.memory_space<vmem>>, vector<1x16xf32>
    %21 = vector.broadcast %20 : vector<1x16xf32> to vector<8x16xf32>
    %22 = arith.addf %19, %21 : vector<8x16xf32>
    %cst_17 = arith.constant 0.000000e+00 : f32
    %23 = vector.broadcast %cst_17 : f32 to vector<8x16xf32>
    %24 = arith.maximumf %22, %23 : vector<8x16xf32>
    %25 = arith.truncf %24 : vector<8x16xf32> to vector<8x16xbf16>
    %c0_18 = arith.constant 0 : index
    %c0_19 = arith.constant 0 : index
    %26 = vector.load %arg8[%c0_18, %c0_19] : memref<16x16xbf16, #tpu.memory_space<vmem>>, vector<16x16xbf16>
    %cst_20 = arith.constant dense<0.000000e+00> : vector<8x16xf32>
    %27 = tpu.matmul %25, %26, %cst_20 {dimension_numbers = #tpu.dot_dimension_numbers<[1], [0], [0], [1], [0, 0, 1, 1], [], []>} : vector<8x16xbf16>, vector<16x16xbf16>, vector<8x16xf32> -> vector<8x16xf32>
    %c0_21 = arith.constant 0 : index
    %c0_22 = arith.constant 0 : index
    %28 = vector.load %arg9[%c0_21, %c0_22] : memref<1x16xf32, #tpu.memory_space<vmem>>, vector<1x16xf32>
    %29 = vector.broadcast %28 : vector<1x16xf32> to vector<8x16xf32>
    %30 = arith.addf %27, %29 : vector<8x16xf32>
    %cst_23 = arith.constant 0.000000e+00 : f32
    %31 = vector.broadcast %cst_23 : f32 to vector<8x16xf32>
    %32 = arith.maximumf %30, %31 : vector<8x16xf32>
    %33 = arith.truncf %32 : vector<8x16xf32> to vector<8x16xbf16>
    %c0_24 = arith.constant 0 : index
    %c0_25 = arith.constant 0 : index
    %34 = vector.load %arg10[%c0_24, %c0_25] : memref<16x64xbf16, #tpu.memory_space<vmem>>, vector<16x64xbf16>
    %cst_26 = arith.constant dense<0.000000e+00> : vector<8x64xf32>
    %35 = tpu.matmul %33, %34, %cst_26 {dimension_numbers = #tpu.dot_dimension_numbers<[1], [0], [0], [1], [0, 0, 1, 1], [], []>} : vector<8x16xbf16>, vector<16x64xbf16>, vector<8x64xf32> -> vector<8x64xf32>
    %c0_27 = arith.constant 0 : index
    %c0_28 = arith.constant 0 : index
    %36 = vector.load %arg11[%c0_27, %c0_28] : memref<1x64xf32, #tpu.memory_space<vmem>>, vector<1x64xf32>
    %37 = vector.broadcast %36 : vector<1x64xf32> to vector<8x64xf32>
    %38 = arith.addf %35, %37 : vector<8x64xf32>
    %cst_29 = arith.constant 0.000000e+00 : f32
    %39 = vector.broadcast %cst_29 : f32 to vector<8x64xf32>
    %40 = arith.maximumf %38, %39 : vector<8x64xf32>
    %41 = arith.truncf %40 : vector<8x64xf32> to vector<8x64xbf16>
    %c0_30 = arith.constant 0 : index
    %c0_31 = arith.constant 0 : index
    %42 = vector.load %arg12[%c0_30, %c0_31] : memref<64x256xbf16, #tpu.memory_space<vmem>>, vector<64x256xbf16>
    %cst_32 = arith.constant dense<0.000000e+00> : vector<8x256xf32>
    %43 = tpu.matmul %41, %42, %cst_32 {dimension_numbers = #tpu.dot_dimension_numbers<[1], [0], [0], [1], [0, 0, 1, 1], [], []>} : vector<8x64xbf16>, vector<64x256xbf16>, vector<8x256xf32> -> vector<8x256xf32>
    %c0_33 = arith.constant 0 : index
    %c0_34 = arith.constant 0 : index
    %44 = vector.load %arg13[%c0_33, %c0_34] : memref<1x256xf32, #tpu.memory_space<vmem>>, vector<1x256xf32>
    %45 = vector.broadcast %44 : vector<1x256xf32> to vector<8x256xf32>
    %46 = arith.addf %43, %45 : vector<8x256xf32>
    %cst_35 = arith.constant 0.000000e+00 : f32
    %47 = vector.broadcast %cst_35 : f32 to vector<8x256xf32>
    %48 = arith.maximumf %46, %47 : vector<8x256xf32>
    %49 = arith.truncf %48 : vector<8x256xf32> to vector<8x256xbf16>
    %c0_36 = arith.constant 0 : index
    %c0_37 = arith.constant 0 : index
    %50 = vector.load %arg14[%c0_36, %c0_37] : memref<256x784xbf16, #tpu.memory_space<vmem>>, vector<256x784xbf16>
    %cst_38 = arith.constant dense<0.000000e+00> : vector<8x784xf32>
    %51 = tpu.matmul %49, %50, %cst_38 {dimension_numbers = #tpu.dot_dimension_numbers<[1], [0], [0], [1], [0, 0, 1, 1], [], []>} : vector<8x256xbf16>, vector<256x784xbf16>, vector<8x784xf32> -> vector<8x784xf32>
    %c0_39 = arith.constant 0 : index
    %c0_40 = arith.constant 0 : index
    %52 = vector.load %arg15[%c0_39, %c0_40] : memref<1x784xf32, #tpu.memory_space<vmem>>, vector<1x784xf32>
    %53 = vector.broadcast %52 : vector<1x784xf32> to vector<8x784xf32>
    %54 = arith.addf %51, %53 : vector<8x784xf32>
    %55 = math.tanh %54 : vector<8x784xf32>
    %c0_41 = arith.constant 0 : index
    %c0_42 = arith.constant 0 : index
    %56 = vector.load %arg16[%c0_41, %c0_42] : memref<8x784xf32, #tpu.memory_space<vmem>>, vector<8x784xf32>
    tpu.vector_store %arg16[%c0_41, %c0_42], %55 {strides = array<i32>} : memref<8x784xf32, #tpu.memory_space<vmem>>, vector<8x784xf32>,
    return
  }
  func.func @transform_0(%arg0: i32) -> (i32, i32) {
    %c0_i32 = arith.constant 0 : i32
    %c0_i32_0 = arith.constant 0 : i32
    return %arg0, %c0_i32 : i32, i32
  }
  func.func @transform_1(%arg0: i32) -> (i32, i32) {
    %c0_i32 = arith.constant 0 : i32
    %c0_i32_0 = arith.constant 0 : i32
    %c0_i32_1 = arith.constant 0 : i32
    return %c0_i32, %c0_i32_0 : i32, i32
  }
  func.func @transform_2(%arg0: i32) -> (i32, i32) {
    %c0_i32 = arith.constant 0 : i32
    %c0_i32_0 = arith.constant 0 : i32
    %c0_i32_1 = arith.constant 0 : i32
    return %c0_i32, %c0_i32_0 : i32, i32
  }
  func.func @transform_3(%arg0: i32) -> (i32, i32) {
    %c0_i32 = arith.constant 0 : i32
    %c0_i32_0 = arith.constant 0 : i32
    %c0_i32_1 = arith.constant 0 : i32
    return %c0_i32, %c0_i32_0 : i32, i32
  }
  func.func @transform_4(%arg0: i32) -> (i32, i32) {
    %c0_i32 = arith.constant 0 : i32
    %c0_i32_0 = arith.constant 0 : i32
    %c0_i32_1 = arith.constant 0 : i32
    return %c0_i32, %c0_i32_0 : i32, i32
  }
  func.func @transform_5(%arg0: i32) -> (i32, i32) {
    %c0_i32 = arith.constant 0 : i32
    %c0_i32_0 = arith.constant 0 : i32
    %c0_i32_1 = arith.constant 0 : i32
    return %c0_i32, %c0_i32_0 : i32, i32
  }
  func.func @transform_6(%arg0: i32) -> (i32, i32) {
    %c0_i32 = arith.constant 0 : i32
    %c0_i32_0 = arith.constant 0 : i32
    %c0_i32_1 = arith.constant 0 : i32
    return %c0_i32, %c0_i32_0 : i32, i32
  }
  func.func @transform_7(%arg0: i32) -> (i32, i32) {
    %c0_i32 = arith.constant 0 : i32
    %c0_i32_0 = arith.constant 0 : i32
    %c0_i32_1 = arith.constant 0 : i32
    return %c0_i32, %c0_i32_0 : i32, i32
  }
  func.func @transform_8(%arg0: i32) -> (i32, i32) {
    %c0_i32 = arith.constant 0 : i32
    %c0_i32_0 = arith.constant 0 : i32
    %c0_i32_1 = arith.constant 0 : i32
    return %c0_i32, %c0_i32_0 : i32, i32
  }
  func.func @transform_9(%arg0: i32) -> (i32, i32) {
    %c0_i32 = arith.constant 0 : i32
    %c0_i32_0 = arith.constant 0 : i32
    %c0_i32_1 = arith.constant 0 : i32
    return %c0_i32, %c0_i32_0 : i32, i32
  }
  func.func @transform_10(%arg0: i32) -> (i32, i32) {
    %c0_i32 = arith.constant 0 : i32
    %c0_i32_0 = arith.constant 0 : i32
    %c0_i32_1 = arith.constant 0 : i32
    return %c0_i32, %c0_i32_0 : i32, i32
  }
  func.func @transform_11(%arg0: i32) -> (i32, i32) {
    %c0_i32 = arith.constant 0 : i32
    %c0_i32_0 = arith.constant 0 : i32
    %c0_i32_1 = arith.constant 0 : i32
    return %c0_i32, %c0_i32_0 : i32, i32
  }
  func.func @transform_12(%arg0: i32) -> (i32, i32) {
    %c0_i32 = arith.constant 0 : i32
    %c0_i32_0 = arith.constant 0 : i32
    %c0_i32_1 = arith.constant 0 : i32
    return %c0_i32, %c0_i32_0 : i32, i32
  }
  func.func @transform_13(%arg0: i32) -> (i32, i32) {
    %c0_i32 = arith.constant 0 : i32
    %c0_i32_0 = arith.constant 0 : i32
    %c0_i32_1 = arith.constant 0 : i32
    return %c0_i32, %c0_i32_0 : i32, i32
  }
  func.func @transform_14(%arg0: i32) -> (i32, i32) {
    %c0_i32 = arith.constant 0 : i32
    %c0_i32_0 = arith.constant 0 : i32
    %c0_i32_1 = arith.constant 0 : i32
    return %c0_i32, %c0_i32_0 : i32, i32
  }
  func.func @transform_15(%arg0: i32) -> (i32, i32) {
    %c0_i32 = arith.constant 0 : i32
    %c0_i32_0 = arith.constant 0 : i32
    return %arg0, %c0_i32 : i32, i32
  }
}

</mosaic_0001>

<bundles_post_ra>
// kernel: forward.1
= control target key start
LH: loop header
LB: loop body
LE: loop exit
PB: predicated region body
PF: predicated region fallthrough
CT: control target
= control target key end

     0   :  { %20 = vsyncpa [#allocation3], 0  ;;  %s4571_s0 = inlined_call_operand.vmem [shape: f32[32,784], index: 0, kind: input, shape index: {}]   ;;  %s4572_s1 = inlined_call_operand.vmem [shape: bf16[784,256], index: 1, kind: input, shape index: {}]   ;;  %s4573_s2 = inlined_call_operand.vmem [shape: f32[1,256], index: 2, kind: input, shape index: {}]   ;;  %s4574_s3 = inlined_call_operand.vmem [shape: bf16[256,64], index: 3, kind: input, shape index: {}]   ;;  %s4575_s4 = inlined_call_operand.vmem [shape: f32[1,64], index: 4, kind: input, shape index: {}]   ;;  %s4576_s5 = inlined_call_operand.vmem [shape: bf16[64,16], index: 5, kind: input, shape index: {}]   ;;  %s4577_s6 = inlined_call_operand.vmem [shape: f32[1,16], index: 6, kind: input, shape index: {}]   ;;  %s4578_s7 = inlined_call_operand.vmem [shape: bf16[16,16], index: 7, kind: input, shape index: {}]   ;;  %s4579_s8 = inlined_call_operand.vmem [shape: f32[1,16], index: 8, kind: input, shape index: {}]   ;;  %s4580_s9 = inlined_call_operand.vmem [shape: bf16[16,64], index: 9, kind: input, shape index: {}]   ;;  %s4581_s10 = inlined_call_operand.vmem [shape: f32[1,64], index: 10, kind: input, shape index: {}]   ;;  %s4582_s11 = inlined_call_operand.vmem [shape: bf16[64,256], index: 11, kind: input, shape index: {}]   ;;  %s4583_s12 = inlined_call_operand.vmem [shape: f32[1,256], index: 12, kind: input, shape index: {}]   ;;  %s4584_s13 = inlined_call_operand.vmem [shape: bf16[256,784], index: 13, kind: input, shape index: {}]   ;;  %s4585_s14 = inlined_call_operand.vmem [shape: f32[1,784], index: 14, kind: input, shape index: {}]   ;;  %s4586_s15 = inlined_call_operand.hbm [shape: f32[32,784], index: 15, kind: output, shape index: {}]  }
   0x1   :  { %22 = vsyncpa [#allocation3 + $0x1], 0  ;;  %s3656_s18 = smov 0   ;;  %s3658_s19 = smov 0  }
   0x2   :  { %s3660_s20 = smov 0   ;;  %s3662_s21 = smov 0  }
   0x3 LB: > { %4593 = sst [smem:[#allocation5_spill]] %s3558_s18  ;;  %s3677_s22 = sadd.s32 4294967295, %s3570_s21   ;;  %s3570_s21 = sphi %s3662_s21, %s4604_s21   ;;  %s3566_s20 = sphi %s3660_s20, %s4606_s20   ;;  %s3562_s19 = sphi %s3658_s19, %s4608_s19   ;;  %s3558_s18 = sphi %s3656_s18, %s4607_s18  }
   0x4   : > { %4594 = sst [smem:[#allocation6_spill]] %s3566_s20  ;;  %s2762_s23 = sadd.s32 4294967294, %s3570_s21  }
   0x5   : > { %4595 = sst [smem:[#allocation7_spill]] %s3570_s21  ;;  %s3681_s24 = sadd.s32 1, %s3570_s21  }
   0x6   : > { %4596 = sst [smem:[#allocation8_spill]] %s3681_s24  ;;  %s355_s25 = sadd.s32 1, %s3566_s20 }
   0x7   : > { %s352_s26 = ssub.s32 %s3570_s21, %s3681_s24  ;;  %p365_p0 = scmp.ne.s32.totalorder %s3566_s20, %s3562_s19 }
   0x8   : > { %p353_p1 = scmp.eq.s32.totalorder %s352_s26, 0  ;;  %p366_p2 = scmp.eq.s32.totalorder %s3677_s22, 3 }
   0x9   : > { %p371_p3 = scmp.ne.s32.totalorder %s3562_s19, %s3558_s18  ;;  %p372_p4 = scmp.eq.s32.totalorder %s2762_s23, 3 }
   0xa   : > { %s3692_s27 = scalar_select %p353_p1, %s3566_s20, %s355_s25  }
   0xb   : > { %p3694_p5 = por %p366_p2, %p365_p0  ;;  %p3698_p6 = por %p372_p4, %p371_p3 }
   0xc   : > { %4597 = sst [smem:[#allocation9_spill]] %s3692_s27  ;;  %p2765_p7 = scmp.ge.s32.totalorder %s3570_s21, 1 }
   0xd   : > { %s4599_s29 = scalar_select %p3698_p6, 1, 0 }
   0xe   : > { %p440_p8 = scmp.lt.s32.totalorder %s3570_s21, 5 }
   0xf   : > { %4600 = sst [smem:[#allocation10_spill]] %s4599_s29 }
  0x10   : > { %p441_p9 = pnand %p2765_p7, %p440_p8 }
  0x11   : > { %v3153_v0 = vld [vmem:[%s4572_s1 + $0x4] ss:$8 sps:$4 sm:$0xff] (!%p441_p9)   ;;  %v3155_v1 = vld [vmem:[%s4572_s1] ss:$8 sps:$4 sm:$0xff] (!%p441_p9)   ;;  %v3156_v2 = vld [vmem:[%s4572_s1 + $0x14] ss:$8 sps:$4 sm:$0xff] (!%p441_p9)  }
  0x12   : > { %444 = sbr.rel (%p441_p9) target bundleno = 1865 (0x749), region = 80  ;;  %1112 = vmatprep.subr.bf16.mxu0 (!%p441_p9), %v3153_v0  ;;  %v3158_v3 = vld [vmem:[%s4572_s1 + $0x10] ss:$8 sps:$4 sm:$0xff] (!%p441_p9)   ;;  %v3159_v4 = vld [vmem:[%s4572_s1 + $0x24] ss:$8 sps:$4 sm:$0xff] (!%p441_p9)   ;;  %p488_p10 = scmp.lt.s32.totalorder (!%p441_p9), %s3677_s22, 3 }
  0x13   : > { %1113 = vmatpush1.bf16.msra.mxu0 (!%p441_p9), %v3155_v1  ;;  %v3161_v5 = vld [vmem:[%s4572_s1 + $0x20] ss:$8 sps:$4 sm:$0xff] (!%p441_p9)   ;;  %v3162_v6 = vld [vmem:[%s4572_s1 + $0x34] ss:$8 sps:$4 sm:$0xff] (!%p441_p9)   ;;  %v3164_v7 = vld [vmem:[%s4572_s1 + $0x30] ss:$8 sps:$4 sm:$0xff] (!%p441_p9)  }
  0x14   : > { %1114 = vmatprep.subr.bf16.mxu0 (!%p441_p9), %v3156_v2  ;;  %v3165_v8 = vld [vmem:[%s4572_s1 + $0x44] ss:$8 sps:$4 sm:$0xff] (!%p441_p9)   ;;  %v3167_v9 = vld [vmem:[%s4572_s1 + $0x40] ss:$8 sps:$4 sm:$0xff] (!%p441_p9)   ;;  %v3168_v10 = vld [vmem:[%s4572_s1 + $0x54] ss:$8 sps:$4 sm:$0xff] (!%p441_p9)  }
  0x15   : > { %v3170_v11 = vld [vmem:[%s4572_s1 + $0x50] ss:$8 sps:$4 sm:$0xff] (!%p441_p9)   ;;  %v3171_v12 = vld [vmem:[%s4572_s1 + $0x64] ss:$8 sps:$4 sm:$0xff] (!%p441_p9)   ;;  %v3173_v15 = vld [vmem:[%s4572_s1 + $0x60] ss:$8 sps:$4 sm:$0xff] (!%p441_p9)  }
  0x16   : > { %v3174_v16 = vld [vmem:[%s4572_s1 + $0x74] ss:$8 sps:$4 sm:$0xff] (!%p441_p9)   ;;  %v3176_v17 = vld [vmem:[%s4572_s1 + $0x70] ss:$8 sps:$4 sm:$0xff] (!%p441_p9)   ;;  %v3177_v18 = vld [vmem:[%s4572_s1 + $0x84] ss:$8 sps:$4 sm:$0xff] (!%p441_p9)  }
  0x17   : > { %1115 = vmatpush1.bf16.msra.mxu0 (!%p441_p9), %v3158_v3  ;;  %v3179_v19 = vld [vmem:[%s4572_s1 + $0x80] ss:$8 sps:$4 sm:$0xff] (!%p441_p9)   ;;  %v3180_v20 = vld [vmem:[%s4572_s1 + $0x94] ss:$8 sps:$4 sm:$0xff] (!%p441_p9)   ;;  %v3182_v21 = vld [vmem:[%s4572_s1 + $0x90] ss:$8 sps:$4 sm:$0xff] (!%p441_p9)  }
  0x18   : > { %1116 = vmatprep.subr.bf16.mxu0 (!%p441_p9), %v3159_v4  ;;  %v3183_v22 = vld [vmem:[%s4572_s1 + $0xa4] ss:$8 sps:$4 sm:$0xff] (!%p441_p9)   ;;  %v3185_v23 = vld [vmem:[%s4572_s1 + $0xa0] ss:$8 sps:$4 sm:$0xff] (!%p441_p9)   ;;  %v3186_v24 = vld [vmem:[%s4572_s1 + $0xb4] ss:$8 sps:$4 sm:$0xff] (!%p441_p9)  }
  0x19   : > { %s489_s26 = scalar_select %p488_p10, %s3677_s22, 3  ;;  %v3188_v25 = vld [vmem:[%s4572_s1 + $0xb0] ss:$8 sps:$4 sm:$0xff]   ;;  %v3189_v26 = vld [vmem:[%s4572_s1 + $0xc4] ss:$8 sps:$4 sm:$0xff]   ;;  %v3572_v42 = vmov 0  }
  0x1a   : > { %v3191_v27 = vld [vmem:[%s4572_s1 + $0xc0] ss:$8 sps:$4 sm:$0xff]   ;;  %v3192_v28 = vld [vmem:[%s4572_s1 + $0xd4] ss:$8 sps:$4 sm:$0xff]   ;;  %v3194_v29 = vld [vmem:[%s4572_s1 + $0xd0] ss:$8 sps:$4 sm:$0xff]   ;;  %1267 = vmatprep.mubr.bf16.mxu1 %v3572_v42 }
  0x1b   : > { %1117 = vmatpush1.bf16.msra.mxu0 %v3161_v5  ;;  %s3109_s29 = smul.u32 56, %s489_s26  ;;  %v3195_v30 = vld [vmem:[%s4572_s1 + $0xe4] ss:$8 sps:$4 sm:$0xff]   ;;  %v3197_v31 = vld [vmem:[%s4572_s1 + $0xe0] ss:$8 sps:$4 sm:$0xff]   ;;  %vm1108_vm0 = vcmask 130048  }
  0x1c   : > { %1118 = vmatprep.subr.bf16.mxu0 %v3162_v6  ;;  %v3198_v32 = vld [vmem:[%s4572_s1 + $0xf4] ss:$8 sps:$4 sm:$0xff]   ;;  %v3200_v33 = vld [vmem:[%s4572_s1 + $0xf0] ss:$8 sps:$4 sm:$0xff]   ;;  %v3203_v34 = vld [vmem:[%s4572_s1 + $0x104] ss:$8 sps:$4 sm:$0xff]  }
  0x1d   : > { %s3742_s20 = scalar_lea.vmem %s4571_s0, %s3109_s29  ;;  %v3201_v38 = vld [vmem:[%s4572_s1 + $0x100] ss:$8 sps:$4 sm:$0xff]   ;;  %v3206_v39 = vld [vmem:[%s4572_s1 + $0x114] ss:$8 sps:$4 sm:$0xff]   ;;  %v3294_v41 = vld [vmem:[%s4572_s1 + $0x304] ss:$8 sps:$4 sm:$0xff]  }
  0x1e   : > { %v495_v13 = vld [vmem:[%s3742_s20 + $0x8] sm:$0xff]  ;;  %v494_v35 = vld [vmem:[%s3742_s20] sm:$0xff]  ;;  %v497_v36 = vld [vmem:[%s3742_s20 + $0x18] sm:$0xff]  ;;  %1235 = vmatprep.subr.bf16.mxu1 %v3294_v41  ;;  %vm3574_vm1 = vmmov 0   ;;  %vm1496_vm2 = vcmask 523264   ;;  %s485_s23 = sand.u32 1, %s3562_s19  }
  0x1f   : > { %1119 = vmatpush1.bf16.msra.mxu0 %v3164_v7  ;;  %v502_v14 = vpack.c.bf16 %v495_v13, %v495_v13  ;;  %v501_v37 = vpack.c.bf16 %v494_v35, %v494_v35  ;;  %v504_v40 = vpack.c.bf16 %v497_v36, %v497_v36  ;;  %v3204_v43 = vld [vmem:[%s4572_s1 + $0x110] ss:$8 sps:$4 sm:$0xff]   ;;  %v3299_v44 = vld [vmem:[%s4572_s1 + $0x300] ss:$8 sps:$4 sm:$0xff]   ;;  %v3209_v45 = vld [vmem:[%s4572_s1 + $0x124] ss:$8 sps:$4 sm:$0xff]  }
  0x20   : > { %1120 = vmatprep.subr.bf16.mxu0 %v3165_v8  ;;  %v500_v46 = vld [vmem:[%s3742_s20 + $0x30] sm:$0xff]  ;;  %1236 = vmatpush1.bf16.msra.mxu1 %v3299_v44  ;;  %v3300_v48 = vld [vmem:[%s4574_s3 + $0x40] sm:$0xff]   ;;  %v3302_v51 = vld [vmem:[%s4574_s3 + $0x48] sm:$0xff]   ;;  %s3108_s25 = smul.u32 56, %s485_s23  ;;  %s2689_s17 = scalar_lea.sflag [#allocation3], %s485_s23 }
  0x21   : > { %1144 = vmatprep.mubr.bf16.mxu0 %v502_v14  ;;  %v507_v47 = vpack.c.bf16 %v500_v46, %v500_v46  ;;  %v3207_v49 = vld [vmem:[%s4572_s1 + $0x120] ss:$8 sps:$4 sm:$0xff]   ;;  %3019 = vmatprep.subr.bf16.mxu1 %v3300_v48  ;;  %v3212_v52 = vld [vmem:[%s4572_s1 + $0x134] ss:$8 sps:$4 sm:$0xff]   ;;  %v3210_v55 = vld [vmem:[%s4572_s1 + $0x130] ss:$8 sps:$4 sm:$0xff]  }
  0x22   : > { %v3301_v50 = vld [vmem:[%s4574_s3] sm:$0xff]   ;;  %v3303_v53 = vld [vmem:[%s4574_s3 + $0x8] sm:$0xff]   ;;  %v3304_v54 = vld [vmem:[%s4574_s3 + $0x50] sm:$0xff]   ;;  %s4509_s27 = scalar_lea.vmem [#allocation2], %s3108_s25  ;;  %s3110_s24 = smul.u32 896, %s3677_s22 }
  0x23   : > { %1121 = vmatpush1.bf16.msra.mxu0 %v3167_v9  ;;  %2865 = vmatmul.mubr.msk.bf16.vlgmr.msra.gmra.mrb[0].mxu1 %vm1108_vm0, %v507_v47  ;;  %v3215_v56 = vld [vmem:[%s4572_s1 + $0x144] ss:$8 sps:$4 sm:$0xff]   ;;  %v3305_v57 = vld [vmem:[%s4574_s3 + $0x10] sm:$0xff]   ;;  %v3213_v58 = vld [vmem:[%s4572_s1 + $0x140] ss:$8 sps:$4 sm:$0xff]   ;;  %s2703_s26 = sshll.u32 %s4509_s27, 4  ;;  %s4527_s26 = int_to_ptr.vmem [resolvable:$true] %s2703_s26 }
  0x24   : > { %1122 = vmatprep.subr.bf16.mxu0 %v3168_v10  ;;  %3020 = vmatpush3.bf16.msra.mxu1 %v3301_v50  ;;  %v3306_v59 = vld [vmem:[%s4574_s3 + $0x58] sm:$0xff]   ;;  %v3308_v62 = vld [vmem:[%s4574_s3 + $0x60] sm:$0xff]   ;;  %s4525_s16 = scalar_lea.hbm %s4586_s15, %s3110_s24  ;;  %s3508_s18 = scalar_lea.vmem %s4527_s26, 896 }
  0x25   : > { %3021 = vmatprep.subr.bf16.mxu1 %v3302_v51  ;;  %v3218_v60 = vld [vmem:[%s4572_s1 + $0x154] ss:$8 sps:$4 sm:$0xff]   ;;  %v3216_v63 = vld [vmem:[%s4572_s1 + $0x150] ss:$8 sps:$4 sm:$0xff]   ;;  %v3221_v0 = vld [vmem:[%s4572_s1 + $0x164] ss:$8 sps:$4 sm:$0xff]   ;;  %p3509_p11 = scmp.ne.s32.totalorder %s4527_s26, %s3508_s18 }
  0x26   : > { %v3307_v61 = vld [vmem:[%s4574_s3 + $0x18] sm:$0xff]   ;;  %v3309_v1 = vld [vmem:[%s4574_s3 + $0x20] sm:$0xff]   ;;  %s3575_s22 = smov [#allocation2]  }
  0x27   : > { %1123 = vmatpush1.bf16.msra.mxu0 %v3170_v11  ;;  %v3219_v2 = vld [vmem:[%s4572_s1 + $0x160] ss:$8 sps:$4 sm:$0xff]   ;;  %v3224_v3 = vld [vmem:[%s4572_s1 + $0x174] ss:$8 sps:$4 sm:$0xff]   ;;  %v3222_v4 = vld [vmem:[%s4572_s1 + $0x170] ss:$8 sps:$4 sm:$0xff]   ;;  %p3510_p12 = pnand %p3509_p11, %p3694_p5 }
  0x28   : > { %1124 = vmatprep.subr.bf16.mxu0 %v3171_v12  ;;  %3022 = vmatpush3.bf16.msra.mxu1 %v3303_v53  ;;  %v3227_v5 = vld [vmem:[%s4572_s1 + $0x184] ss:$8 sps:$4 sm:$0xff]   ;;  %v3225_v6 = vld [vmem:[%s4572_s1 + $0x180] ss:$8 sps:$4 sm:$0xff]   ;;  %v3230_v7 = vld [vmem:[%s4572_s1 + $0x194] ss:$8 sps:$4 sm:$0xff]  }
  0x29   : > { %3023 = vmatprep.subr.bf16.mxu1 %v3304_v54  ;;  %v3228_v8 = vld [vmem:[%s4572_s1 + $0x190] ss:$8 sps:$4 sm:$0xff]   ;;  %v3233_v9 = vld [vmem:[%s4572_s1 + $0x1a4] ss:$8 sps:$4 sm:$0xff]   ;;  %v3231_v10 = vld [vmem:[%s4572_s1 + $0x1a0] ss:$8 sps:$4 sm:$0xff]   ;;  %p3511_p13 = pneg %p3510_p12 }
  0x2a   : > { %v3236_v11 = vld [vmem:[%s4572_s1 + $0x1b4] ss:$8 sps:$4 sm:$0xff]   ;;  %v3234_v12 = vld [vmem:[%s4572_s1 + $0x1b0] ss:$8 sps:$4 sm:$0xff]   ;;  %v3239_v13 = vld [vmem:[%s4572_s1 + $0x1c4] ss:$8 sps:$4 sm:$0xff]  }
  0x2b   : > { %1125 = vmatpush1.bf16.msra.mxu0 %v3173_v15  ;;  %v3237_v14 = vld [vmem:[%s4572_s1 + $0x1c0] ss:$8 sps:$4 sm:$0xff]   ;;  %v3242_v15 = vld [vmem:[%s4572_s1 + $0x1d4] ss:$8 sps:$4 sm:$0xff]   ;;  %v3264_v36 = vld [vmem:[%s4572_s1 + $0x250] ss:$8 sps:$4 sm:$0xff]  }
  0x2c   : > { %1126 = vmatprep.subr.bf16.mxu0 %v3174_v16  ;;  %3024 = vmatpush3.bf16.msra.mxu1 %v3305_v57  ;;  %v3240_v16 = vld [vmem:[%s4572_s1 + $0x1d0] ss:$8 sps:$4 sm:$0xff]   ;;  %v3266_v35 = vld [vmem:[%s4572_s1 + $0x254] ss:$8 sps:$4 sm:$0xff]   ;;  %v3273_v44 = vld [vmem:[%s4572_s1 + $0x280] ss:$8 sps:$4 sm:$0xff]  }
  0x2d   : > { %3025 = vmatprep.subr.bf16.mxu1 %v3306_v59  ;;  %v3270_v41 = vld [vmem:[%s4572_s1 + $0x270] ss:$8 sps:$4 sm:$0xff]   ;;  %v3281_v47 = vld [vmem:[%s4572_s1 + $0x2a4] ss:$8 sps:$4 sm:$0xff]   ;;  %v3279_v48 = vld [vmem:[%s4572_s1 + $0x2a0] ss:$8 sps:$4 sm:$0xff]  }
  0x2e   : > { %v3276_v46 = vld [vmem:[%s4572_s1 + $0x290] ss:$8 sps:$4 sm:$0xff]   ;;  %v3287_v51 = vld [vmem:[%s4572_s1 + $0x2c4] ss:$8 sps:$4 sm:$0xff]   ;;  %v3290_v53 = vld [vmem:[%s4572_s1 + $0x2d4] ss:$8 sps:$4 sm:$0xff]  }
  0x2f   : > { %1127 = vmatpush1.bf16.msra.mxu0 %v3176_v17  ;;  %v3245_v17 = vld [vmem:[%s4572_s1 + $0x1e4] ss:$8 sps:$4 sm:$0xff]   ;;  %v3282_v50 = vld [vmem:[%s4572_s1 + $0x2b0] ss:$8 sps:$4 sm:$0xff]   ;;  %v3298_v57 = vld [vmem:[%s4572_s1 + $0x2f4] ss:$8 sps:$4 sm:$0xff]  }
  0x30   : > { %1128 = vmatprep.subr.bf16.mxu0 %v3177_v18  ;;  %3026 = vmatpush3.bf16.msra.mxu1 %v3307_v61  ;;  %v3243_v18 = vld [vmem:[%s4572_s1 + $0x1e0] ss:$8 sps:$4 sm:$0xff]   ;;  %v3288_v54 = vld [vmem:[%s4572_s1 + $0x2d0] ss:$8 sps:$4 sm:$0xff]   ;;  %s3512_s21 = sshll.u32 %s3575_s22, 4  ;;  %s3513_s21 = int_to_ptr.vmem [resolvable:$false] %s3512_s21 }
  0x31   : > { %3027 = vmatprep.subr.bf16.mxu1 %v3308_v62  ;;  %v498_v59 = vld [vmem:[%s3742_s20 + $0x20] sm:$0xff]  ;;  %v3311_v61 = vld [vmem:[%s4574_s3 + $0x28] sm:$0xff]   ;;  %v3312_v62 = vld [vmem:[%s4574_s3 + $0x70] sm:$0xff]   ;;  %s3514_s29 = scalar_lea.vmem %s3513_s21, 1792  ;;  %p3515_p0 = scmp.lt.s32.totalorder %s4527_s26, %s3513_s21 }
  0x32   : > { %p3516_p1 = scmp.lt.s32.totalorder %s3514_s29, %s3508_s18 }
  0x33   : > { %1129 = vmatpush1.bf16.msra.mxu0 %v3179_v19  ;;  %v3248_v19 = vld [vmem:[%s4572_s1 + $0x1f4] ss:$8 sps:$4 sm:$0xff]  }
  0x34   : > { %1130 = vmatprep.subr.bf16.mxu0 %v3180_v20  ;;  %3028 = vmatpush3.bf16.msra.mxu1 %v3309_v1  ;;  %v3246_v20 = vld [vmem:[%s4572_s1 + $0x1f0] ss:$8 sps:$4 sm:$0xff]   ;;  %p3517_p2 = por %p3516_p1, %p3515_p0 }
  0x35   : > { %v3314_v1 = vld [vmem:[%s4574_s3 + $0x78] sm:$0xff]  }
  0x36   : > { %p3518_p3 = pnand %p3517_p2, %p3511_p13 }
  0x37   : > { %1131 = vmatpush1.bf16.msra.mxu0 %v3182_v21  ;;  %v496_v21 = vld [vmem:[%s3742_s20 + $0x10] sm:$0xff] }
  0x38   : > { %1132 = vmatprep.subr.bf16.mxu0 %v3183_v22  ;;  %v3251_v22 = vld [vmem:[%s4572_s1 + $0x204] ss:$8 sps:$4 sm:$0xff]  }
  0x3b   : > { %1133 = vmatpush1.bf16.msra.mxu0 %v3185_v23  ;;  %v499_v23 = vld [vmem:[%s3742_s20 + $0x28] sm:$0xff] }
  0x3c   : > { %1134 = vmatprep.subr.bf16.mxu0 %v3186_v24  ;;  %v3249_v24 = vld [vmem:[%s4572_s1 + $0x200] ss:$8 sps:$4 sm:$0xff]  }
  0x3f   : > { %1135 = vmatpush1.bf16.msra.mxu0 %v3188_v25  ;;  %v503_v25 = vpack.c.bf16 %v496_v21, %v496_v21 }
  0x40   : > { %1136 = vmatprep.subr.bf16.mxu0 %v3189_v26  ;;  %v3254_v26 = vld [vmem:[%s4572_s1 + $0x214] ss:$8 sps:$4 sm:$0xff]  }
  0x43   : > { %1137 = vmatpush1.bf16.msra.mxu0 %v3191_v27  ;;  %v506_v27 = vpack.c.bf16 %v499_v23, %v499_v23 }
  0x44   : > { %1138 = vmatprep.subr.bf16.mxu0 %v3192_v28  ;;  %v3252_v28 = vld [vmem:[%s4572_s1 + $0x210] ss:$8 sps:$4 sm:$0xff]  }
  0x47   : > { %1139 = vmatpush1.bf16.msra.mxu0 %v3194_v29  ;;  %v3257_v29 = vld [vmem:[%s4572_s1 + $0x224] ss:$8 sps:$4 sm:$0xff]  }
  0x48   : > { %1140 = vmatprep.subr.bf16.mxu0 %v3195_v30  ;;  %v3255_v30 = vld [vmem:[%s4572_s1 + $0x220] ss:$8 sps:$4 sm:$0xff]  }
  0x4b   : > { %1141 = vmatpush1.bf16.msra.mxu0 %v3197_v31  ;;  %v3260_v31 = vld [vmem:[%s4572_s1 + $0x234] ss:$8 sps:$4 sm:$0xff]  }
  0x4c   : > { %1142 = vmatprep.subr.bf16.mxu0 %v3198_v32  ;;  %v3258_v32 = vld [vmem:[%s4572_s1 + $0x230] ss:$8 sps:$4 sm:$0xff]  }
  0x4f   : > { %1143 = vmatpush1.bf16.msra.mxu0 %v3200_v33  ;;  %v3263_v33 = vld [vmem:[%s4572_s1 + $0x244] ss:$8 sps:$4 sm:$0xff]  }
  0x50   : > { %1153 = vmatprep.subr.bf16.mxu0 %v3203_v34  ;;  %v3261_v34 = vld [vmem:[%s4572_s1 + $0x240] ss:$8 sps:$4 sm:$0xff]  }
  0x52   : > { %1145 = vmatmul.mubr.bf16.vlgmr.msra.gmra.mrb[0].mxu0 %v501_v37  ;;  %v3269_v37 = vld [vmem:[%s4572_s1 + $0x264] ss:$8 sps:$4 sm:$0xff]  }
  0x53   : > { %1154 = vmatpush1.bf16.msra.mxu0 %v3201_v38  ;;  %1185 = vmatprep.mubr.bf16.mxu0 %v504_v40  ;;  %v3267_v38 = vld [vmem:[%s4572_s1 + $0x260] ss:$8 sps:$4 sm:$0xff]  }
  0x54   : > { %1155 = vmatprep.subr.bf16.mxu0 %v3206_v39  ;;  %v3272_v39 = vld [vmem:[%s4572_s1 + $0x274] ss:$8 sps:$4 sm:$0xff]   ;;  %v3310_v40 = vld [vmem:[%s4574_s3 + $0x68] sm:$0xff]  }
  0x55   : > { %3029 = vmatprep.subr.bf16.mxu1 %v3310_v40  ;;  %v2883_v40 = vld [vmem:[%s4577_s6] ss:$0 sm:$0xff] }
  0x56   : > { %3030 = vmatpush3.bf16.msra.mxu1 %v3311_v61  ;;  %v3325_v61 = vld [vmem:[%s4582_s11 + $0x10] ss:$8 sps:$4 sm:$0xff]  }
  0x57   : > { %1156 = vmatpush1.bf16.msra.mxu0 %v3204_v43  ;;  %v3275_v43 = vld [vmem:[%s4572_s1 + $0x284] ss:$8 sps:$4 sm:$0xff]   ;;  %3031 = vmatprep.subr.bf16.mxu1 %v3312_v62 }
  0x58   : > { %1157 = vmatprep.subr.bf16.mxu0 %v3209_v45  ;;  %v3278_v45 = vld [vmem:[%s4572_s1 + $0x294] ss:$8 sps:$4 sm:$0xff]   ;;  %v3330_v62 = vld [vmem:[%s4582_s11 + $0x24] ss:$8 sps:$4 sm:$0xff]  }
  0x5b   : > { %1158 = vmatpush1.bf16.msra.mxu0 %v3207_v49  ;;  %v3284_v49 = vld [vmem:[%s4572_s1 + $0x2b4] ss:$8 sps:$4 sm:$0xff]  }
  0x5c   : > { %1159 = vmatprep.subr.bf16.mxu0 %v3212_v52  ;;  %v3285_v52 = vld [vmem:[%s4572_s1 + $0x2c0] ss:$8 sps:$4 sm:$0xff]  }
  0x5f   : > { %1160 = vmatpush1.bf16.msra.mxu0 %v3210_v55  ;;  %v3293_v55 = vld [vmem:[%s4572_s1 + $0x2e4] ss:$8 sps:$4 sm:$0xff]  }
  0x60   : > { %1161 = vmatprep.subr.bf16.mxu0 %v3215_v56  ;;  %v3291_v56 = vld [vmem:[%s4572_s1 + $0x2e0] ss:$8 sps:$4 sm:$0xff]  }
  0x63   : > { %1162 = vmatpush1.bf16.msra.mxu0 %v3213_v58  ;;  %v3296_v58 = vld [vmem:[%s4572_s1 + $0x2f0] ss:$8 sps:$4 sm:$0xff]  }
  0x64   : > { %1163 = vmatprep.subr.bf16.mxu0 %v3218_v60  ;;  %v505_v60 = vpack.c.bf16 %v498_v59, %v498_v59 }
  0x67   : > { %1164 = vmatpush1.bf16.msra.mxu0 %v3216_v63  ;;  %v3313_v63 = vld [vmem:[%s4574_s3 + $0x30] sm:$0xff]  }
  0x68   : > { %1165 = vmatprep.subr.bf16.mxu0 %v3221_v0  ;;  %3032 = vmatpush3.bf16.msra.mxu1 %v3313_v63  ;;  %v3328_v63 = vld [vmem:[%s4582_s11 + $0x20] ss:$8 sps:$4 sm:$0xff]  }
  0x69   : > { %3033 = vmatprep.subr.bf16.mxu1 %v3314_v1  ;;  %v3336_v1 = vld [vmem:[%s4584_s13 + $0x4] ss:$28 sps:$4 sm:$0xff]  }
  0x6b   : > { %1166 = vmatpush1.bf16.msra.mxu0 %v3219_v2 }
  0x6c   : > { %1167 = vmatprep.subr.bf16.mxu0 %v3224_v3  ;;  %v3315_v3 = vld [vmem:[%s4574_s3 + $0x38] sm:$0xff]  }
  0x6d   : > { %3034 = vmatpush3.bf16.msra.mxu1 %v3315_v3  ;;  %v3339_v3 = vld [vmem:[%s4584_s13 + $0x14] ss:$28 sps:$4 sm:$0xff]  }
  0x6f   : > { %1168 = vmatpush1.bf16.msra.mxu0 %v3222_v4 }
  0x70   : > { %1169 = vmatprep.subr.bf16.mxu0 %v3227_v5 }
  0x73   : > { %1170 = vmatpush1.bf16.msra.mxu0 %v3225_v6  ;;  %v3573_v6 = vmov 0.0  }
  0x74   : > { %1171 = vmatprep.subr.bf16.mxu0 %v3230_v7  ;;  %3072 = vmatprep.subr.bf16.mxu1 %v3573_v6  ;;  %v608_v7 = vlaneseq }
  0x77   : > { %1172 = vmatpush1.bf16.msra.mxu0 %v3228_v8  ;;  %v4063_v8 = vshrl.u32 %v608_v7, 7  ;;  %v3351_v7 = vld [vmem:[%s4584_s13 + $0x84] ss:$28 sps:$4 sm:$0xff]  }
  0x78   : > { %1173 = vmatprep.subr.bf16.mxu0 %v3233_v9 }
  0x79   : > { %v4066_v9 = vsub.s32 0, %v4063_v8 }
  0x7b   : > { %1174 = vmatpush1.bf16.msra.mxu0 %v3231_v10  ;;  %v606_v10 = vld [vmem:[%s4573_s2] sm:$0x3] }
  0x7c   : > { %1175 = vmatprep.subr.bf16.mxu0 %v3236_v11  ;;  %v4072_v11 = vsub.s32 1, %v4063_v8 }
  0x7f   : > { %1176 = vmatpush1.bf16.msra.mxu0 %v3234_v12  ;;  %v611_v12 = vrot.slane %v606_v10, %v4066_v9 }
  0x80   : > { %1177 = vmatprep.subr.bf16.mxu0 %v3239_v13  ;;  %v615_v13 = vrot.slane %v606_v10, %v4072_v11  ;;  %v3355_v10 = vld [vmem:[%s4584_s13 + $0xb8] ss:$28 sps:$4 sm:$0xff]  }
  0x83   : > { %1178 = vmatpush1.bf16.msra.mxu0 %v3237_v14 }
  0x84   : > { %1179 = vmatprep.subr.bf16.mxu0 %v3242_v15 }
  0x87   : > { %1180 = vmatpush1.bf16.msra.mxu0 %v3240_v16 }
  0x88   : > { %1181 = vmatprep.subr.bf16.mxu0 %v3245_v17 }
  0x8b   : > { %1182 = vmatpush1.bf16.msra.mxu0 %v3243_v18 }
  0x8c   : > { %1183 = vmatprep.subr.bf16.mxu0 %v3248_v19 }
  0x8f   : > { %1184 = vmatpush1.bf16.msra.mxu0 %v3246_v20 }
  0x90   : > { %1194 = vmatprep.subr.bf16.mxu0 %v3251_v22 }
  0x92   : > { %1186 = vmatmul.mubr.bf16.vlgmr.msra.gmra.mrb[0].mxu0 %v503_v25  ;;  %v3316_v25 = vld [vmem:[%s4576_s5] sm:$0xff]  }
  0x93   : > { %1195 = vmatpush1.bf16.msra.mxu0 %v3249_v24  ;;  %1226 = vmatprep.mubr.bf16.mxu0 %v506_v27  ;;  %v3317_v27 = vld [vmem:[%s4576_s5 + $0x8] sm:$0xff]  }
  0x94   : > { %1196 = vmatprep.subr.bf16.mxu0 %v3254_v26 }
  0x97   : > { %1197 = vmatpush1.bf16.msra.mxu0 %v3252_v28  ;;  %v3318_v28 = vld [vmem:[%s4576_s5 + $0x10] sm:$0xff]  }
  0x98   : > { %1198 = vmatprep.subr.bf16.mxu0 %v3257_v29  ;;  %v3319_v29 = vld [vmem:[%s4576_s5 + $0x18] sm:$0xff]  }
  0x9b   : > { %1199 = vmatpush1.bf16.msra.mxu0 %v3255_v30 }
  0x9c   : > { %1200 = vmatprep.subr.bf16.mxu0 %v3260_v31  ;;  %v2866_v31 = vld [vmem:[%s4575_s4] ss:$0 sm:$0xff] }
  0x9f   : > { %1201 = vmatpush1.bf16.msra.mxu0 %v3258_v32 }
  0xa0   : > { %1202 = vmatprep.subr.bf16.mxu0 %v3263_v33 }
  0xa3   : > { %1203 = vmatpush1.bf16.msra.mxu0 %v3261_v34 }
  0xa4   : > { %1204 = vmatprep.subr.bf16.mxu0 %v3266_v35 }
  0xa7   : > { %1205 = vmatpush1.bf16.msra.mxu0 %v3264_v36 }
  0xa8   : > { %1206 = vmatprep.subr.bf16.mxu0 %v3269_v37 }
  0xab   : > { %1207 = vmatpush1.bf16.msra.mxu0 %v3267_v38  ;;  %v3320_v38 = vld [vmem:[%s4578_s7] sm:$0xff]  }
  0xac   : > { %1208 = vmatprep.subr.bf16.mxu0 %v3272_v39 }
  0xaf   : > { %1209 = vmatpush1.bf16.msra.mxu0 %v3270_v41 }
  0xb0   : > { %1210 = vmatprep.subr.bf16.mxu0 %v3275_v43 }
  0xb3   : > { %1211 = vmatpush1.bf16.msra.mxu0 %v3273_v44 }
  0xb4   : > { %1212 = vmatprep.subr.bf16.mxu0 %v3278_v45 }
  0xb7   : > { %1213 = vmatpush1.bf16.msra.mxu0 %v3276_v46 }
  0xb8   : > { %1214 = vmatprep.subr.bf16.mxu0 %v3281_v47 }
  0xbb   : > { %1215 = vmatpush1.bf16.msra.mxu0 %v3279_v48  ;;  %v3321_v48 = vld [vmem:[%s4580_s9] sm:$0xff]  }
  0xbc   : > { %1216 = vmatprep.subr.bf16.mxu0 %v3284_v49 }
  0xbf   : > { %1217 = vmatpush1.bf16.msra.mxu0 %v3282_v50  ;;  %v3324_v50 = vld [vmem:[%s4582_s11 + $0x4] ss:$8 sps:$4 sm:$0xff]  }
  0xc0   : > { %1218 = vmatprep.subr.bf16.mxu0 %v3287_v51  ;;  %v2889_v51 = vld [vmem:[%s4579_s8] ss:$0 sm:$0xff] }
  0xc3   : > { %1219 = vmatpush1.bf16.msra.mxu0 %v3285_v52 }
  0xc4   : > { %1220 = vmatprep.subr.bf16.mxu0 %v3290_v53 }
  0xc7   : > { %1221 = vmatpush1.bf16.msra.mxu0 %v3288_v54 }
  0xc8   : > { %1222 = vmatprep.subr.bf16.mxu0 %v3293_v55 }
  0xcb   : > { %1223 = vmatpush1.bf16.msra.mxu0 %v3291_v56 }
  0xcc   : > { %1224 = vmatprep.subr.bf16.mxu0 %v3298_v57 }
  0xcf   : > { %1225 = vmatpush1.bf16.msra.mxu0 %v3296_v58  ;;  %v3322_v58 = vld [vmem:[%s4582_s11] ss:$8 sps:$4 sm:$0xff]  }
  0xd0   : > { %2593 = vmatprep.subr.bf16.mxu0 %v3339_v3  ;;  %v3412_v3 = vld [vmem:[%s4584_s13 + $0x2d8] ss:$28 sps:$4 sm:$0xff]  }
  0xd2   : > { %1227 = vmatmul.mubr.bf16.vlgmr.msra.gmra.mrb[0].mxu0 %v505_v60  ;;  %v3327_v60 = vld [vmem:[%s4582_s11 + $0x14] ss:$8 sps:$4 sm:$0xff]  }
  0xf6   : > { %v1269_v0 = vpop.f32.mrb[0].mxu1 }
  0xf7   : > { %v1271_v2 = vpop.f32.mrb[1].mxu1 }
  0xf8   : > { %v1273_v4 = vpop.f32.mrb[2].mxu1 }
  0xf9   : > { %v1274_v5 = vpop.f32.mrb[3].mxu1  ;;  %v3343_v4 = vld [vmem:[%s4584_s13 + $0x48] ss:$28 sps:$4 sm:$0xff]  }
  0xfa   : > { %v3345_v5 = vld [vmem:[%s4584_s13 + $0x4c] ss:$28 sps:$4 sm:$0xff]  }
 0x1a5   : > { %v1228_v14 = vpop.f32.mrb[0].mxu0 }
 0x1a6   : > { %v3096_v15 = vadd.f32 %v1228_v14, %v611_v12  ;;  %v1230_v16 = vpop.f32.mrb[1].mxu0  ;;  %v3357_v12 = vld [vmem:[%s4584_s13 + $0xbc] ss:$28 sps:$4 sm:$0xff]   ;;  %v3363_v14 = vld [vmem:[%s4584_s13 + $0xf4] ss:$28 sps:$4 sm:$0xff]  }
 0x1a7   : > { %v3098_v17 = vadd.f32 %v1230_v16, %v615_v13  ;;  %v1232_v18 = vpop.f32.mrb[2].mxu0  ;;  %v3361_v13 = vld [vmem:[%s4584_s13 + $0xf0] ss:$28 sps:$4 sm:$0xff]  }
 0x1a8   : > { %v3097_v19 = vadd.f32 %v3096_v15, %v1269_v0  ;;  %v1233_v20 = vpop.f32.mrb[3].mxu0  ;;  %v3333_v0 = vld [vmem:[%s4582_s11 + $0x34] ss:$8 sps:$4 sm:$0xff]   ;;  %v3367_v15 = vld [vmem:[%s4584_s13 + $0x128] ss:$28 sps:$4 sm:$0xff]  }
 0x1a9   : > { %v3099_v21 = vadd.f32 %v3098_v17, %v1271_v2  ;;  %v3337_v2 = vld [vmem:[%s4584_s13 + $0x10] ss:$28 sps:$4 sm:$0xff]   ;;  %v3373_v17 = vld [vmem:[%s4584_s13 + $0x160] ss:$28 sps:$4 sm:$0xff]  }
 0x1aa   : > { %v1276_v22 = vmax.f32 %v3097_v19, 0.0  ;;  %2594 = vmatpush1.bf16.msra.mxu0 %v3337_v2  ;;  %v3369_v16 = vld [vmem:[%s4584_s13 + $0x12c] ss:$28 sps:$4 sm:$0xff]   ;;  %v3375_v18 = vld [vmem:[%s4584_s13 + $0x164] ss:$28 sps:$4 sm:$0xff]  }
 0x1ab   : > { %v1277_v23 = vmax.f32 %v3099_v21, 0.0  ;;  %2595 = vmatprep.subr.bf16.mxu0 %v3345_v5  ;;  %v3379_v19 = vld [vmem:[%s4584_s13 + $0x198] ss:$28 sps:$4 sm:$0xff]   ;;  %v3385_v21 = vld [vmem:[%s4584_s13 + $0x1d0] ss:$28 sps:$4 sm:$0xff]  }
 0x1ac   : > { %v1278_v26 = vpack.c.bf16 %v1276_v22, %v1276_v22  ;;  %v3381_v20 = vld [vmem:[%s4584_s13 + $0x19c] ss:$28 sps:$4 sm:$0xff]   ;;  %v3387_v22 = vld [vmem:[%s4584_s13 + $0x1d4] ss:$28 sps:$4 sm:$0xff]  }
 0x1ad   : > { %v1279_v24 = vpack.c.bf16 %v1277_v23, %v1277_v23  ;;  %v3391_v23 = vld [vmem:[%s4584_s13 + $0x208] ss:$28 sps:$4 sm:$0xff]   ;;  %v3414_v2 = vld [vmem:[%s4584_s13 + $0x2dc] ss:$28 sps:$4 sm:$0xff]   ;;  %v3418_v5 = vld [vmem:[%s4584_s13 + $0x310] ss:$28 sps:$4 sm:$0xff]  }
 0x1ae   : > { %2596 = vmatpush1.bf16.msra.mxu0 %v3343_v4  ;;  %v3420_v4 = vld [vmem:[%s4584_s13 + $0x314] ss:$28 sps:$4 sm:$0xff]  }
 0x1af   : > { %1447 = vmatprep.mubr.bf16.mxu1 %v1279_v24  ;;  %2597 = vmatprep.subr.bf16.mxu0 %v3351_v7  ;;  %v3393_v24 = vld [vmem:[%s4584_s13 + $0x20c] ss:$28 sps:$4 sm:$0xff]   ;;  %v3421_v7 = vld [vmem:[%s4584_s13 + $0x320] ss:$28 sps:$4 sm:$0xff]  }
 0x1b0   : > { %1448 = vmatmul.mubr.bf16.vlgmr.msra.gmra.mrb[4].mxu1 %v1278_v26  ;;  %v3399_v26 = vld [vmem:[%s4584_s13 + $0x244] ss:$28 sps:$4 sm:$0xff]  }
 0x1b1   : > { %3073 = vmatpush3.bf16.msra.mxu1 %v3316_v25  ;;  %3080 = vmatprep.mubr.msk.bf16.mxu1 %vm3574_vm1, %v3573_v6  ;;  %v3397_v25 = vld [vmem:[%s4584_s13 + $0x240] ss:$28 sps:$4 sm:$0xff]  }
 0x1b2   : > { %3074 = vmatprep.subr.bf16.mxu1 %v3573_v6 }
 0x1b5   : > { %3075 = vmatpush3.bf16.msra.mxu1 %v3317_v27  ;;  %v3403_v27 = vld [vmem:[%s4584_s13 + $0x278] ss:$28 sps:$4 sm:$0xff]  }
 0x1b6   : > { %3076 = vmatprep.subr.bf16.mxu1 %v3573_v6 }
 0x1b9   : > { %3077 = vmatpush3.bf16.msra.mxu1 %v3318_v28  ;;  %v3405_v28 = vld [vmem:[%s4584_s13 + $0x27c] ss:$28 sps:$4 sm:$0xff]  }
 0x1ba   : > { %3078 = vmatprep.subr.bf16.mxu1 %v3573_v6 }
 0x1bd   : > { %3079 = vmatpush3.bf16.msra.mxu1 %v3319_v29  ;;  %v3409_v29 = vld [vmem:[%s4584_s13 + $0x2b0] ss:$28 sps:$4 sm:$0xff]  }
 0x1be   : > { %3084 = vmatprep.subr.bf16.mxu1 %v3573_v6 }
 0x283   : > { %v3035_v30 = vpop.f32.mrb[4].mxu1 }
 0x284   : > { %v3036_v32 = vpop.f32.mrb[5].mxu1 }
 0x285   : > { %v3037_v33 = vadd.f32 %v3036_v32, %v3035_v30  ;;  %v3038_v34 = vpop.f32.mrb[6].mxu1  ;;  %v3411_v30 = vld [vmem:[%s4584_s13 + $0x2b4] ss:$28 sps:$4 sm:$0xff]   ;;  %v3417_v32 = vld [vmem:[%s4584_s13 + $0x2ec] ss:$28 sps:$4 sm:$0xff]  }
 0x286   : > { %v3039_v35 = vpop.f32.mrb[7].mxu1 }
 0x287   : > { %v1450_v36 = vadd.f32 %v3037_v33, %v2866_v31  ;;  %v3415_v31 = vld [vmem:[%s4584_s13 + $0x2e8] ss:$28 sps:$4 sm:$0xff]   ;;  %v2892_v33 = vld [vmem:[%s4581_s10] ss:$0 sm:$0xff] }
 0x289   : > { %v1455_v37 = vmax.f32 %v1450_v36, 0.0 }
 0x28b   : > { %v1456_v39 = vpack.c.bf16 %v1455_v37, %v1455_v37 }
 0x28d   : > { %3081 = vmatmul.mubr.msk.bf16.vlgmr.msra.gmra.mrb[8].mxu1 %vm1496_vm2, %v1456_v39 }
 0x28e   : > { %3085 = vmatpush3.bf16.msra.mxu1 %v3320_v38  ;;  %3086 = vmatprep.mubr.msk.bf16.mxu1 %vm3574_vm1, %v3573_v6 }
 0x28f   : > { %3090 = vmatprep.subr.bf16.mxu1 %v3573_v6 }
 0x360   : > { %v1534_v41 = vpop.f32.mrb[8].mxu1 }
 0x361   : > { %v1535_v43 = vadd.f32 %v2883_v40, %v1534_v41  ;;  %v3082_v44 = vpop.f32.mrb[9].mxu1  ;;  %v3334_v40 = vld [vmem:[%s4584_s13] ss:$28 sps:$4 sm:$0xff]  }
 0x362   : > { %v1537_v45 = vpop.f32.mrb[10].mxu1  ;;  %v3340_v44 = vld [vmem:[%s4584_s13 + $0x38] ss:$28 sps:$4 sm:$0xff]  }
 0x363   : > { %v1540_v46 = vmax.f32 %v1535_v43, 0.0  ;;  %v3083_v47 = vpop.f32.mrb[11].mxu1  ;;  %v3342_v43 = vld [vmem:[%s4584_s13 + $0x3c] ss:$28 sps:$4 sm:$0xff]   ;;  %v3348_v45 = vld [vmem:[%s4584_s13 + $0x74] ss:$28 sps:$4 sm:$0xff]  }
 0x364   : > { %v3354_v47 = vld [vmem:[%s4584_s13 + $0xac] ss:$28 sps:$4 sm:$0xff]  }
 0x365   : > { %v1541_v49 = vpack.c.bf16 %v1540_v46, %v1540_v46  ;;  %v3346_v46 = vld [vmem:[%s4584_s13 + $0x70] ss:$28 sps:$4 sm:$0xff]  }
 0x367   : > { %3087 = vmatmul.mubr.msk.bf16.vlgmr.msra.gmra.mrb[12].mxu1 %vm1108_vm0, %v1541_v49  ;;  %v3360_v49 = vld [vmem:[%s4584_s13 + $0xe4] ss:$28 sps:$4 sm:$0xff]  }
 0x368   : > { %3091 = vmatpush3.bf16.msra.mxu1 %v3321_v48  ;;  %3092 = vmatprep.mubr.msk.bf16.mxu1 %vm3574_vm1, %v3573_v6  ;;  %v3349_v6 = vld [vmem:[%s4584_s13 + $0x80] ss:$28 sps:$4 sm:$0xff]   ;;  %v3352_v48 = vld [vmem:[%s4584_s13 + $0xa8] ss:$28 sps:$4 sm:$0xff]  }
 0x369   : > { %1725 = vmatprep.subr.bf16.mxu1 %v3324_v50  ;;  %2598 = vmatpush1.bf16.msra.mxu0 %v3349_v6  ;;  %v3358_v50 = vld [vmem:[%s4584_s13 + $0xe0] ss:$28 sps:$4 sm:$0xff]  }
 0x36a   : > { %2599 = vmatprep.subr.bf16.mxu0 %v3357_v12  ;;  %v3423_v6 = vld [vmem:[%s4584_s13 + $0x324] ss:$28 sps:$4 sm:$0xff]  }
 0x36b   : > { %v3424_v12 = vld [vmem:[%s4584_s13 + $0x348] ss:$28 sps:$4 sm:$0xff]  }
 0x36d   : > { %2600 = vmatpush1.bf16.msra.mxu0 %v3355_v10  ;;  %v3426_v10 = vld [vmem:[%s4584_s13 + $0x34c] ss:$28 sps:$4 sm:$0xff]  }
 0x36e   : > { %2601 = vmatprep.subr.bf16.mxu0 %v3363_v14  ;;  %v3427_v14 = vld [vmem:[%s4584_s13 + $0x358] ss:$28 sps:$4 sm:$0xff]  }
 0x371   : > { %2602 = vmatpush1.bf16.msra.mxu0 %v3361_v13  ;;  %v3429_v13 = vld [vmem:[%s4584_s13 + $0x35c] ss:$28 sps:$4 sm:$0xff]  }
 0x372   : > { %2603 = vmatprep.subr.bf16.mxu0 %v3369_v16  ;;  %v1670_v16 = vld [vmem:[%s4583_s12] sm:$0x3] }
 0x375   : > { %2604 = vmatpush1.bf16.msra.mxu0 %v3367_v15  ;;  %v3432_v15 = vld [vmem:[%s4584_s13 + $0xc] ss:$28 sps:$4 sm:$0xff]  }
 0x376   : > { %2605 = vmatprep.subr.bf16.mxu0 %v3375_v18  ;;  %v1679_v18 = vrot.slane %v1670_v16, %v4072_v11 }
 0x379   : > { %2606 = vmatpush1.bf16.msra.mxu0 %v3373_v17  ;;  %v1675_v17 = vrot.slane %v1670_v16, %v4066_v9  ;;  %v1898_v16 = vld [vmem:[%s4585_s14] sm:$0x7f] }
 0x37a   : > { %2607 = vmatprep.subr.bf16.mxu0 %v3381_v20 }
 0x37d   : > { %2608 = vmatpush1.bf16.msra.mxu0 %v3379_v19 }
 0x37e   : > { %2609 = vmatprep.subr.bf16.mxu0 %v3387_v22 }
 0x381   : > { %2610 = vmatpush1.bf16.msra.mxu0 %v3385_v21 }
 0x382   : > { %2611 = vmatprep.subr.bf16.mxu0 %v3393_v24 }
 0x385   : > { %2612 = vmatpush1.bf16.msra.mxu0 %v3391_v23 }
 0x386   : > { %2613 = vmatprep.subr.bf16.mxu0 %v3399_v26 }
 0x389   : > { %2614 = vmatpush1.bf16.msra.mxu0 %v3397_v25 }
 0x38a   : > { %2615 = vmatprep.subr.bf16.mxu0 %v3405_v28  ;;  %v3430_v28 = vld [vmem:[%s4584_s13 + $0x8] ss:$28 sps:$4 sm:$0xff]  }
 0x38d   : > { %2616 = vmatpush1.bf16.msra.mxu0 %v3403_v27 }
 0x38e   : > { %2617 = vmatprep.subr.bf16.mxu0 %v3411_v30  ;;  %v3435_v30 = vld [vmem:[%s4584_s13 + $0x44] ss:$28 sps:$4 sm:$0xff]  }
 0x391   : > { %2618 = vmatpush1.bf16.msra.mxu0 %v3409_v29 }
 0x392   : > { %2619 = vmatprep.subr.bf16.mxu0 %v3417_v32  ;;  %v3438_v32 = vld [vmem:[%s4584_s13 + $0x7c] ss:$28 sps:$4 sm:$0xff]  }
 0x395   : > { %2620 = vmatpush1.bf16.msra.mxu0 %v3415_v31  ;;  %v3433_v31 = vld [vmem:[%s4584_s13 + $0x40] ss:$28 sps:$4 sm:$0xff]  }
 0x396   : > { %2621 = vmatprep.subr.bf16.mxu0 %v3423_v6  ;;  %v3488_v6 = vld [vmem:[%s4584_s13 + $0x2f0] ss:$28 sps:$4 sm:$0xff]  }
 0x399   : > { %2622 = vmatpush1.bf16.msra.mxu0 %v3421_v7  ;;  %v3489_v7 = vld [vmem:[%s4584_s13 + $0x130] ss:$28 sps:$4 sm:$0xff]  }
 0x39a   : > { %2623 = vmatprep.subr.bf16.mxu0 %v3429_v13  ;;  %v3492_v13 = vld [vmem:[%s4584_s13 + $0x360] ss:$28 sps:$4 sm:$0xff]  }
 0x39d   : > { %2624 = vmatpush1.bf16.msra.mxu0 %v3427_v14  ;;  %v3493_v14 = vld [vmem:[%s4584_s13 + $0x1a0] ss:$28 sps:$4 sm:$0xff]  }
 0x43a   : > { %v1594_v52 = vpop.f32.mrb[12].mxu1 }
 0x43b   : > { %v1595_v53 = vadd.f32 %v2889_v51, %v1594_v52  ;;  %v3088_v54 = vpop.f32.mrb[13].mxu1  ;;  %v3366_v51 = vld [vmem:[%s4584_s13 + $0x11c] ss:$28 sps:$4 sm:$0xff]  }
 0x43c   : > { %v1597_v55 = vpop.f32.mrb[14].mxu1  ;;  %v3364_v52 = vld [vmem:[%s4584_s13 + $0x118] ss:$28 sps:$4 sm:$0xff]   ;;  %v3370_v54 = vld [vmem:[%s4584_s13 + $0x150] ss:$28 sps:$4 sm:$0xff]  }
 0x43d   : > { %v1600_v56 = vmax.f32 %v1595_v53, 0.0  ;;  %v3089_v57 = vpop.f32.mrb[15].mxu1  ;;  %v3372_v53 = vld [vmem:[%s4584_s13 + $0x154] ss:$28 sps:$4 sm:$0xff]   ;;  %v3378_v55 = vld [vmem:[%s4584_s13 + $0x18c] ss:$28 sps:$4 sm:$0xff]  }
 0x43e   : > { %v3384_v57 = vld [vmem:[%s4584_s13 + $0x1c4] ss:$28 sps:$4 sm:$0xff]  }
 0x43f   : > { %v1601_v59 = vpack.c.bf16 %v1600_v56, %v1600_v56  ;;  %v3376_v56 = vld [vmem:[%s4584_s13 + $0x188] ss:$28 sps:$4 sm:$0xff]  }
 0x441   : > { %3093 = vmatmul.mubr.msk.bf16.vlgmr.msra.gmra.mrb[16].mxu1 %vm1108_vm0, %v1601_v59  ;;  %v3390_v59 = vld [vmem:[%s4584_s13 + $0x1fc] ss:$28 sps:$4 sm:$0xff]  }
 0x442   : > { %1726 = vmatpush1.bf16.msra.mxu1 %v3322_v58  ;;  %1757 = vmatprep.mubr.bf16.mxu1 %v3572_v42  ;;  %v3331_v42 = vld [vmem:[%s4582_s11 + $0x30] ss:$8 sps:$4 sm:$0xff]   ;;  %v3382_v58 = vld [vmem:[%s4584_s13 + $0x1c0] ss:$28 sps:$4 sm:$0xff]  }
 0x443   : > { %1727 = vmatprep.subr.bf16.mxu1 %v3327_v60  ;;  %v3388_v60 = vld [vmem:[%s4584_s13 + $0x1f8] ss:$28 sps:$4 sm:$0xff]  }
 0x446   : > { %1728 = vmatpush1.bf16.msra.mxu1 %v3325_v61  ;;  %v3396_v61 = vld [vmem:[%s4584_s13 + $0x234] ss:$28 sps:$4 sm:$0xff]  }
 0x447   : > { %1729 = vmatprep.subr.bf16.mxu1 %v3330_v62  ;;  %v3394_v62 = vld [vmem:[%s4584_s13 + $0x230] ss:$28 sps:$4 sm:$0xff]  }
 0x44a   : > { %1730 = vmatpush1.bf16.msra.mxu1 %v3328_v63  ;;  %v3402_v63 = vld [vmem:[%s4584_s13 + $0x26c] ss:$28 sps:$4 sm:$0xff]  }
 0x44b   : > { %1731 = vmatprep.subr.bf16.mxu1 %v3333_v0  ;;  %v3400_v0 = vld [vmem:[%s4584_s13 + $0x268] ss:$28 sps:$4 sm:$0xff]  }
 0x44e   : > { %1732 = vmatpush1.bf16.msra.mxu1 %v3331_v42  ;;  %v3408_v42 = vld [vmem:[%s4584_s13 + $0x2a4] ss:$28 sps:$4 sm:$0xff]  }
 0x44f   : > { %2511 = vmatprep.subr.bf16.mxu1 %v3336_v1  ;;  %v3406_v1 = vld [vmem:[%s4584_s13 + $0x2a0] ss:$28 sps:$4 sm:$0xff]  }
 0x514   : > { %v1654_v34 = vpop.f32.mrb[16].mxu1 }
 0x515   : > { %v1655_v35 = vadd.f32 %v2892_v33, %v1654_v34  ;;  %v3094_v36 = vpop.f32.mrb[17].mxu1  ;;  %v3436_v33 = vld [vmem:[%s4584_s13 + $0x78] ss:$28 sps:$4 sm:$0xff]  }
 0x516   : > { %v1657_v37 = vpop.f32.mrb[18].mxu1  ;;  %v3441_v34 = vld [vmem:[%s4584_s13 + $0xb4] ss:$28 sps:$4 sm:$0xff]   ;;  %v3444_v36 = vld [vmem:[%s4584_s13 + $0xec] ss:$28 sps:$4 sm:$0xff]  }
 0x517   : > { %v1660_v38 = vmax.f32 %v1655_v35, 0.0  ;;  %v3095_v39 = vpop.f32.mrb[19].mxu1  ;;  %v3439_v35 = vld [vmem:[%s4584_s13 + $0xb0] ss:$28 sps:$4 sm:$0xff]   ;;  %v3442_v37 = vld [vmem:[%s4584_s13 + $0xe8] ss:$28 sps:$4 sm:$0xff]  }
 0x518   : > { %v3445_v39 = vld [vmem:[%s4584_s13 + $0x120] ss:$28 sps:$4 sm:$0xff]  }
 0x519   : > { %v1661_v41 = vpack.c.bf16 %v1660_v38, %v1660_v38  ;;  %v3447_v38 = vld [vmem:[%s4584_s13 + $0x124] ss:$28 sps:$4 sm:$0xff]  }
 0x51b   : > { %2903 = vmatmul.mubr.msk.bf16.vlgmr.msra.gmra.mrb[20].mxu1 %vm1496_vm2, %v1661_v41  ;;  %v3448_v41 = vld [vmem:[%s4584_s13 + $0x158] ss:$28 sps:$4 sm:$0xff]  }
 0x51c   : > { %2512 = vmatpush1.bf16.msra.mxu1 %v3334_v40  ;;  %v3450_v40 = vld [vmem:[%s4584_s13 + $0x15c] ss:$28 sps:$4 sm:$0xff]  }
 0x51d   : > { %2513 = vmatprep.subr.bf16.mxu1 %v3342_v43  ;;  %v3453_v43 = vld [vmem:[%s4584_s13 + $0x194] ss:$28 sps:$4 sm:$0xff]  }
 0x520   : > { %2514 = vmatpush1.bf16.msra.mxu1 %v3340_v44  ;;  %v3451_v44 = vld [vmem:[%s4584_s13 + $0x190] ss:$28 sps:$4 sm:$0xff]  }
 0x521   : > { %2515 = vmatprep.subr.bf16.mxu1 %v3348_v45  ;;  %v3456_v45 = vld [vmem:[%s4584_s13 + $0x1cc] ss:$28 sps:$4 sm:$0xff]  }
 0x524   : > { %2516 = vmatpush1.bf16.msra.mxu1 %v3346_v46  ;;  %v3454_v46 = vld [vmem:[%s4584_s13 + $0x1c8] ss:$28 sps:$4 sm:$0xff]  }
 0x525   : > { %2517 = vmatprep.subr.bf16.mxu1 %v3354_v47  ;;  %v3459_v47 = vld [vmem:[%s4584_s13 + $0x204] ss:$28 sps:$4 sm:$0xff]  }
 0x528   : > { %2518 = vmatpush1.bf16.msra.mxu1 %v3352_v48  ;;  %v3457_v48 = vld [vmem:[%s4584_s13 + $0x200] ss:$28 sps:$4 sm:$0xff]  }
 0x529   : > { %2519 = vmatprep.subr.bf16.mxu1 %v3360_v49  ;;  %v3462_v49 = vld [vmem:[%s4584_s13 + $0x23c] ss:$28 sps:$4 sm:$0xff]  }
 0x52c   : > { %2520 = vmatpush1.bf16.msra.mxu1 %v3358_v50  ;;  %v3460_v50 = vld [vmem:[%s4584_s13 + $0x238] ss:$28 sps:$4 sm:$0xff]  }
 0x52d   : > { %2521 = vmatprep.subr.bf16.mxu1 %v3366_v51  ;;  %v3465_v51 = vld [vmem:[%s4584_s13 + $0x274] ss:$28 sps:$4 sm:$0xff]  }
 0x530   : > { %2522 = vmatpush1.bf16.msra.mxu1 %v3364_v52  ;;  %v3463_v52 = vld [vmem:[%s4584_s13 + $0x270] ss:$28 sps:$4 sm:$0xff]  }
 0x531   : > { %2523 = vmatprep.subr.bf16.mxu1 %v3372_v53  ;;  %v3468_v53 = vld [vmem:[%s4584_s13 + $0x2ac] ss:$28 sps:$4 sm:$0xff]  }
 0x534   : > { %2524 = vmatpush1.bf16.msra.mxu1 %v3370_v54  ;;  %v3466_v54 = vld [vmem:[%s4584_s13 + $0x2a8] ss:$28 sps:$4 sm:$0xff]  }
 0x535   : > { %2525 = vmatprep.subr.bf16.mxu1 %v3378_v55  ;;  %v3471_v55 = vld [vmem:[%s4584_s13 + $0x2e4] ss:$28 sps:$4 sm:$0xff]  }
 0x538   : > { %2526 = vmatpush1.bf16.msra.mxu1 %v3376_v56  ;;  %v3469_v56 = vld [vmem:[%s4584_s13 + $0x2e0] ss:$28 sps:$4 sm:$0xff]  }
 0x539   : > { %2527 = vmatprep.subr.bf16.mxu1 %v3384_v57  ;;  %v3474_v57 = vld [vmem:[%s4584_s13 + $0x31c] ss:$28 sps:$4 sm:$0xff]  }
 0x53c   : > { %2528 = vmatpush1.bf16.msra.mxu1 %v3382_v58  ;;  %v3472_v58 = vld [vmem:[%s4584_s13 + $0x318] ss:$28 sps:$4 sm:$0xff]  }
 0x53d   : > { %2529 = vmatprep.subr.bf16.mxu1 %v3390_v59  ;;  %v3477_v59 = vld [vmem:[%s4584_s13 + $0x354] ss:$28 sps:$4 sm:$0xff]  }
 0x540   : > { %2530 = vmatpush1.bf16.msra.mxu1 %v3388_v60  ;;  %v3475_v60 = vld [vmem:[%s4584_s13 + $0x350] ss:$28 sps:$4 sm:$0xff]  }
 0x541   : > { %2531 = vmatprep.subr.bf16.mxu1 %v3396_v61  ;;  %v3478_v61 = vld [vmem:[%s4584_s13 + $0x1d8] ss:$28 sps:$4 sm:$0xff]  }
 0x544   : > { %2532 = vmatpush1.bf16.msra.mxu1 %v3394_v62  ;;  %v3479_v62 = vld [vmem:[%s4584_s13 + $0x18] ss:$28 sps:$4 sm:$0xff]  }
 0x545   : > { %2533 = vmatprep.subr.bf16.mxu1 %v3402_v63  ;;  %v3480_v63 = vld [vmem:[%s4584_s13 + $0x210] ss:$28 sps:$4 sm:$0xff]  }
 0x548   : > { %2534 = vmatpush1.bf16.msra.mxu1 %v3400_v0  ;;  %v3481_v0 = vld [vmem:[%s4584_s13 + $0x50] ss:$28 sps:$4 sm:$0xff]  }
 0x549   : > { %2535 = vmatprep.subr.bf16.mxu1 %v3408_v42  ;;  %v3482_v42 = vld [vmem:[%s4584_s13 + $0x248] ss:$28 sps:$4 sm:$0xff]  }
 0x54c   : > { %2536 = vmatpush1.bf16.msra.mxu1 %v3406_v1  ;;  %v3483_v1 = vld [vmem:[%s4584_s13 + $0x88] ss:$28 sps:$4 sm:$0xff]  }
 0x54d   : > { %2537 = vmatprep.subr.bf16.mxu1 %v3414_v2  ;;  %v3484_v2 = vld [vmem:[%s4584_s13 + $0x280] ss:$28 sps:$4 sm:$0xff]  }
 0x550   : > { %2538 = vmatpush1.bf16.msra.mxu1 %v3412_v3  ;;  %v3485_v3 = vld [vmem:[%s4584_s13 + $0xc0] ss:$28 sps:$4 sm:$0xff]  }
 0x551   : > { %2539 = vmatprep.subr.bf16.mxu1 %v3420_v4  ;;  %v3486_v4 = vld [vmem:[%s4584_s13 + $0x2b8] ss:$28 sps:$4 sm:$0xff]  }
 0x554   : > { %2540 = vmatpush1.bf16.msra.mxu1 %v3418_v5  ;;  %v3487_v5 = vld [vmem:[%s4584_s13 + $0xf8] ss:$28 sps:$4 sm:$0xff]  }
 0x555   : > { %2541 = vmatprep.subr.bf16.mxu1 %v3426_v10  ;;  %v3490_v10 = vld [vmem:[%s4584_s13 + $0x328] ss:$28 sps:$4 sm:$0xff]  }
 0x558   : > { %2542 = vmatpush1.bf16.msra.mxu1 %v3424_v12  ;;  %v3491_v12 = vld [vmem:[%s4584_s13 + $0x168] ss:$28 sps:$4 sm:$0xff]  }
 0x559   : > { %2552 = vmatprep.subr.bf16.mxu1 %v3432_v15  ;;  %v1918_v15 = vsub.s32 4, %v4063_v8 }
 0x5ee   : > { %v1759_v19 = vpop.f32.mrb[20].mxu1 }
 0x5ef   : > { %v1760_v20 = vadd.f32 %v1759_v19, %v1675_v17  ;;  %v1761_v21 = vpop.f32.mrb[21].mxu1  ;;  %v1922_v17 = vsub.s32 5, %v4063_v8  ;;  %v1919_v19 = vrot.slane %v1898_v16, %v1918_v15 }
 0x5f0   : > { %v1762_v22 = vadd.f32 %v1761_v21, %v1679_v18  ;;  %v1763_v23 = vpop.f32.mrb[22].mxu1  ;;  %v1903_v18 = vrot.slane %v1898_v16, %v4066_v9 }
 0x5f1   : > { %v1766_v24 = vmax.f32 %v1760_v20, 0.0  ;;  %v1764_v25 = vpop.f32.mrb[23].mxu1  ;;  %v1907_v20 = vrot.slane %v1898_v16, %v4072_v11  ;;  %v1923_v21 = vrot.slane %v1898_v16, %v1922_v17 }
 0x5f2   : > { %v1767_v26 = vmax.f32 %v1762_v22, 0.0 }
 0x5f3   : > { %v4351_v29 = vpack.c.bf16 %v1766_v24, %v1766_v24 }
 0x5f4   : > { %v4346_v27 = vpack.c.bf16 %v1767_v26, %v1767_v26 }
 0x5f6   : > { %2543 = vmatprep.mubr.bf16.mxu1 %v4346_v27  ;;  %2625 = vmatprep.mubr.bf16.mxu0 %v4346_v27 }
 0x5f7   : > { %2544 = vmatmul.mubr.bf16.vlgmr.msra.gmra.mrb[24].mxu1 %v4351_v29  ;;  %2626 = vmatmul.mubr.bf16.vlgmr.msra.gmra.mrb[4].mxu0 %v4351_v29 }
 0x5f8   : > { %2553 = vmatpush1.bf16.msra.mxu1 %v3430_v28  ;;  %2584 = vmatprep.mubr.bf16.mxu1 %v4346_v27 }
 0x5f9   : > { %2554 = vmatprep.subr.bf16.mxu1 %v3435_v30 }
 0x5fc   : > { %2555 = vmatpush1.bf16.msra.mxu1 %v3433_v31 }
 0x5fd   : > { %2556 = vmatprep.subr.bf16.mxu1 %v3438_v32 }
 0x600   : > { %2557 = vmatpush1.bf16.msra.mxu1 %v3436_v33 }
 0x601   : > { %2558 = vmatprep.subr.bf16.mxu1 %v3441_v34 }
 0x604   : > { %2559 = vmatpush1.bf16.msra.mxu1 %v3439_v35 }
 0x605   : > { %2560 = vmatprep.subr.bf16.mxu1 %v3444_v36  ;;  %v1910_v36 = vsub.s32 2, %v4063_v8 }
 0x608   : > { %2561 = vmatpush1.bf16.msra.mxu1 %v3442_v37  ;;  %v1914_v37 = vsub.s32 3, %v4063_v8 }
 0x609   : > { %2562 = vmatprep.subr.bf16.mxu1 %v3447_v38  ;;  %v1911_v38 = vrot.slane %v1898_v16, %v1910_v36 }
 0x60c   : > { %2563 = vmatpush1.bf16.msra.mxu1 %v3445_v39  ;;  %v1915_v39 = vrot.slane %v1898_v16, %v1914_v37 }
 0x60d   : > { %2564 = vmatprep.subr.bf16.mxu1 %v3450_v40 }
 0x610   : > { %2565 = vmatpush1.bf16.msra.mxu1 %v3448_v41 }
 0x611   : > { %2566 = vmatprep.subr.bf16.mxu1 %v3453_v43 }
 0x614   : > { %2567 = vmatpush1.bf16.msra.mxu1 %v3451_v44 }
 0x615   : > { %2568 = vmatprep.subr.bf16.mxu1 %v3456_v45 }
 0x618   : > { %2569 = vmatpush1.bf16.msra.mxu1 %v3454_v46 }
 0x619   : > { %2570 = vmatprep.subr.bf16.mxu1 %v3459_v47 }
 0x61c   : > { %2571 = vmatpush1.bf16.msra.mxu1 %v3457_v48 }
 0x61d   : > { %2572 = vmatprep.subr.bf16.mxu1 %v3462_v49  ;;  %v1926_v49 = vsub.s32 6, %v4063_v8 }
 0x620   : > { %2573 = vmatpush1.bf16.msra.mxu1 %v3460_v50 }
 0x621   : > { %2574 = vmatprep.subr.bf16.mxu1 %v3465_v51  ;;  %v1927_v51 = vrot.slane %v1898_v16, %v1926_v49 }
 0x624   : > { %2575 = vmatpush1.bf16.msra.mxu1 %v3463_v52 }
 0x625   : > { %2576 = vmatprep.subr.bf16.mxu1 %v3468_v53 }
 0x628   : > { %2577 = vmatpush1.bf16.msra.mxu1 %v3466_v54 }
 0x629   : > { %2578 = vmatprep.subr.bf16.mxu1 %v3471_v55 }
 0x62c   : > { %2579 = vmatpush1.bf16.msra.mxu1 %v3469_v56 }
 0x62d   : > { %2580 = vmatprep.subr.bf16.mxu1 %v3474_v57 }
 0x630   : > { %2581 = vmatpush1.bf16.msra.mxu1 %v3472_v58 }
 0x631   : > { %2582 = vmatprep.subr.bf16.mxu1 %v3477_v59 }
 0x634   : > { %2583 = vmatpush1.bf16.msra.mxu1 %v3475_v60 }
 0x635   : > { %3050 = vmatprep.subr.bf16.mxu1 %v3478_v61 }
 0x637   : > { %2585 = vmatmul.mubr.bf16.vlgmr.msra.gmra.mrb[28].mxu1 %v4351_v29 }
 0x638   : > { %3051 = vmatpush3.bf16.msra.mxu1 %v3479_v62  ;;  %2666 = vmatprep.mubr.bf16.mxu1 %v4346_v27 }
 0x639   : > { %3052 = vmatprep.subr.bf16.mxu1 %v3480_v63 }
 0x63c   : > { %3053 = vmatpush3.bf16.msra.mxu1 %v3481_v0 }
 0x63d   : > { %3054 = vmatprep.subr.bf16.mxu1 %v3482_v42 }
 0x640   : > { %3055 = vmatpush3.bf16.msra.mxu1 %v3483_v1 }
 0x641   : > { %3056 = vmatprep.subr.bf16.mxu1 %v3484_v2 }
 0x644   : > { %3057 = vmatpush3.bf16.msra.mxu1 %v3485_v3 }
 0x645   : > { %3058 = vmatprep.subr.bf16.mxu1 %v3486_v4 }
 0x648   : > { %3059 = vmatpush3.bf16.msra.mxu1 %v3487_v5 }
 0x649   : > { %3060 = vmatprep.subr.bf16.mxu1 %v3488_v6 }
 0x64c   : > { %3061 = vmatpush3.bf16.msra.mxu1 %v3489_v7 }
 0x64d   : > { %3062 = vmatprep.subr.bf16.mxu1 %v3490_v10 }
 0x650   : > { %3063 = vmatpush3.bf16.msra.mxu1 %v3491_v12 }
 0x651   : > { %3064 = vmatprep.subr.bf16.mxu1 %v3492_v13 }
 0x654   : > { %3065 = vmatpush3.bf16.msra.mxu1 %v3493_v14 }
 0x657   : > { %2667 = vmatmul.mubr.bf16.vlgmr.msra.gmra.mrb[32].mxu1 %v4351_v29 }
 0x6ca   : > { %v2545_v22 = vpop.f32.mrb[24].mxu1  ;;  %v2627_v23 = vpop.f32.mrb[4].mxu0 }
 0x6cb   : > { %v2546_v24 = vadd.f32 %v2545_v22, %v1903_v18  ;;  %v2628_v25 = vadd.f32 %v2627_v23, %v1919_v19  ;;  %v2547_v26 = vpop.f32.mrb[25].mxu1  ;;  %v2629_v27 = vpop.f32.mrb[5].mxu0 }
 0x6cc   : > { %v2548_v28 = vadd.f32 %v2547_v26, %v1907_v20  ;;  %v2630_v29 = vadd.f32 %v2629_v27, %v1923_v21  ;;  %v2549_v30 = vpop.f32.mrb[26].mxu1  ;;  %v2631_v31 = vpop.f32.mrb[6].mxu0 }
 0x6cd   : > { %3494 = vtanh.f32 %v2546_v24  ;;  %v2550_v32 = vpop.f32.mrb[27].mxu1  ;;  %v2632_v33 = vpop.f32.mrb[7].mxu0 }
 0x6ce   : > { %3496 = vtanh.f32 %v2628_v25 }
 0x6cf   : > { %3498 = vtanh.f32 %v2548_v28 }
 0x6d0   : > { %3500 = vtanh.f32 %v2630_v29 }
 0x6d7   : > { %v3495_v9 = vpop.eup %3494 }
 0x6d8   : > { %v3497_v11 = vpop.eup %3496  ;;  %2681 = vst [vmem:[%s4509_s27] sm:$0xff] %v3495_v9 }
 0x6d9   : > { %v3499_v34 = vpop.eup %3498  ;;  %2685 = vst [vmem:[%s4509_s27 + $0x20] sm:$0xff] %v3497_v11 }
 0x6da   : > { %v3501_v35 = vpop.eup %3500  ;;  %2682 = vst [vmem:[%s4509_s27 + $0x8] sm:$0xff] %v3499_v34 }
 0x6db   : > { %2686 = vst [vmem:[%s4509_s27 + $0x28] sm:$0xff] %v3501_v35 }
 0x70a   : > { %v2586_v40 = vpop.f32.mrb[28].mxu1 }
 0x70b   : > { %v2587_v41 = vadd.f32 %v2586_v40, %v1911_v38  ;;  %v2588_v43 = vpop.f32.mrb[29].mxu1 }
 0x70c   : > { %v2589_v44 = vadd.f32 %v2588_v43, %v1915_v39  ;;  %v2590_v45 = vpop.f32.mrb[30].mxu1 }
 0x70d   : > { %3502 = vtanh.f32 %v2587_v41  ;;  %v2591_v46 = vpop.f32.mrb[31].mxu1 }
 0x70e   : > { %3504 = vtanh.f32 %v2589_v44 }
 0x717   : > { %v3503_v47 = vpop.eup %3502 }
 0x718   : > { %v3505_v48 = vpop.eup %3504  ;;  %2683 = vst [vmem:[%s4509_s27 + $0x10] sm:$0xff] %v3503_v47 }
 0x719   : > { %2684 = vst [vmem:[%s4509_s27 + $0x18] sm:$0xff] %v3505_v48 }
 0x72a   : > { %v3066_v50 = vpop.f32.mrb[32].mxu1 }
 0x72b   : > { %v3067_v52 = vpop.f32.mrb[33].mxu1 }
 0x72c   : > { %v3068_v53 = vadd.f32 %v3067_v52, %v3066_v50  ;;  %v3069_v54 = vpop.f32.mrb[34].mxu1 }
 0x72d   : > { %v3070_v55 = vpop.f32.mrb[35].mxu1 }
 0x72e   : > { %v2669_v56 = vadd.f32 %v3068_v53, %v1927_v51 }
 0x730   : > { %3506 = vtanh.f32 %v2669_v56 }
 0x73a   : > { %v3507_v8 = vpop.eup %3506 }
 0x73b   : > { %2687 = vst.msk [vmem:[%s4509_s27 + $0x30] sm:$0xff] %vm1108_vm0, %v3507_v8 }
 0x73c   : > { %3521 = shalt.err (!%p3518_p3)
}
 0x73d   : > { %s3522_s23 = scalar_lea.hbm %s4525_s16, 896  ;;  %s3526_s24 = scalar_lea.hbm %s4586_s15, 3584 }
 0x73e   : > { %p3523_p4 = scmp.ne.s32.totalorder %s4525_s16, %s3522_s23  ;;  %p3527_p9 = scmp.lt.u32.totalorder %s4525_s16, %s4586_s15 }
 0x73f   : > { %p3528_p10 = scmp.lt.u32.totalorder %s3526_s24, %s3522_s23  ;;  %p3530_p12 = scmp.lt.u32.totalorder %s3522_s23, %s4525_s16 }
 0x740   : > { %p3524_p7 = pnand %p3523_p4, %p3694_p5 }
 0x741   : > { %p3529_p11 = por %p3528_p10, %p3527_p9 }
 0x742   : > { %p3525_p8 = pneg %p3524_p7 }
 0x743   : > { %p3531_p13 = por %p3530_p12, %p3529_p11 }
 0x745   : > { %p3532_p0 = pnand %p3531_p13, %p3525_p8 }
 0x747   : > { %3535 = shalt.err (!%p3532_p0)
}
 0x748   : > { %3111 = dma.vmem_to_hbm [thread:$0]  (%p3694_p5), %s4527_s26, 896, %s4525_s16, %s2689_s17  }
 0x749 PF: > { %s4601_s18 = sld [smem:[#allocation7_spill]]  ;;  %s4602_s22 = sld [smem:[#allocation5_spill]] }
 0x74f   : > { %p3117_p1 = scmp.ge.s32.totalorder %s4601_s18, 2  ;;  %s2715_s29 = sand.u32 1, %s4602_s22  }
 0x750   : > { %s2716_s25 = scalar_lea.sflag [#allocation3], %s2715_s29 }
 0x751   : > { %p3114_p2 = pnand %p3117_p1, %p3698_p6 }
 0x753   : > { %3553 = dma.done.wait (!%p3114_p2), %s2716_s25, 896  }
 0x754   : > { %3555 = vsyncadd (!%p3114_p2), %s2716_s25, 4294966400  ;;  %s4604_s21 = sld [smem:[#allocation8_spill]]  ;;  %s4605_s23 = sld [smem:[#allocation6_spill]] }
 0x755   : > { %s4606_s20 = sld [smem:[#allocation9_spill]]  ;;  %s4607_s18 = smov %s3562_s19 }
 0x75a   : > { %p25_p3 = scmp.ge.s32.totalorder %s4604_s21, 6   ;;  %s4608_s19 = smov %s4605_s23 }
 0x75c   :  { %27 = sbr.rel (!%p25_p3) target bundleno = 3 (0x3), region = 115 }
 0x763   :  { %2721 = vsyncpa [#allocation3], 1 }
 0x764   :  { %2723 = vsyncpa [#allocation3 + $0x1], 1 }

</bundles_post_ra>
